<compile_context>
chip_gen: v5e
topology: v5e:2x2
jax: 0.10.0
libtpu: 0.0.40
codegen_flags: <defaults>
</compile_context>

<pallas_src>
import functools

import jax
import jax.numpy as jnp
from jax.experimental import pallas as pl
from jax.experimental.pallas import tpu as pltpu

LANE = 128


def _round_up(x, m):
    return (x + m - 1) // m * m


@functools.lru_cache(maxsize=1)
def _hw_config():
    """Per-generation tiles / VMEM budget (v5e/v6e: 128 MiB VMEM, v7x: 64 MiB)."""
    try:
        cap = int(pltpu.get_tpu_info().vmem_capacity_bytes)
    except Exception:
        cap = 64 * 1024 * 1024          # conservative fallback (v7x-sized)
    big = cap >= 96 * 1024 * 1024
    return {
        "vmem_limit": (96 if big else 40) * 1024 * 1024,
        "tile_m": 1024 if big else 512,   # 1x1 path spatial-row tile
        "acc_rows": 4096 if big else 2048,  # KxK path target accumulator rows
    }


def _fold_bn(gamma, beta, running_mean, running_var, eps):
    """Inference BatchNorm -> per-channel (scale, shift), computed in f32."""
    gamma = gamma.astype(jnp.float32)
    beta = beta.astype(jnp.float32)
    mean = running_mean.astype(jnp.float32)
    var = running_var.astype(jnp.float32)
    scale = gamma / jnp.sqrt(var + eps)
    shift = beta - mean * scale
    return scale, shift


# --------------------------------------------------------------------------
# Kernels
# --------------------------------------------------------------------------
def _conv_kxk_kernel(x_ref, w_ref, scale_ref, shift_ref, o_ref, *,
                     kh_size, kw_size, toh, ow, sh, sw, cin):
    """One (batch, Cout tile, output-row band): KxK conv via per-tap matmuls.

    x_ref:     (Hp, Wp, Cin)           bf16, full plane (resident)
    w_ref:     (KH, KW, Cin, COt)      bf16
    scale/shift: (1, COt)              f32 folded BatchNorm
    o_ref:     (TOH, OW, COt)
    """
    r = pl.program_id(2)                  # output-row-band index
    row0 = r * (toh * sh)                 # first input row touched by this band
    co_tile = o_ref.shape[-1]
    acc = jnp.zeros((toh * ow, co_tile), jnp.float32)

    if sh == 1 and sw == 1:
        # Load the whole row band once, shift statically per tap.
        band = x_ref[pl.ds(row0, toh + kh_size - 1), :, :]   # (rows, Wp, Cin)
        for kh_i in range(kh_size):
            rows = band[kh_i:kh_i + toh]
            for kw_i in range(kw_size):
                patch = rows[:, kw_i:kw_i + ow, :]            # (TOH, OW, Cin)
                acc = acc + jnp.dot(patch.reshape(toh * ow, cin),
                                    w_ref[kh_i, kw_i],
                                    preferred_element_type=jnp.float32)
    else:
        # TODO(synk): space-to-depth along W in the wrapper would make these
        # unit-stride slices for stride>1 convs.
        for kh_i in range(kh_size):
            for kw_i in range(kw_size):
                h_idx = (pl.ds(row0 + kh_i, toh) if sh == 1
                         else pl.ds(row0 + kh_i, toh, stride=sh))
                w_idx = (pl.ds(kw_i, ow) if sw == 1
                         else pl.ds(kw_i, ow, stride=sw))
                patch = x_ref[h_idx, w_idx, :]
                acc = acc + jnp.dot(patch.reshape(toh * ow, cin),
                                    w_ref[kh_i, kw_i],
                                    preferred_element_type=jnp.float32)

    # Fused BN (folded scale/shift) + ReLU epilogue on the f32 accumulator.
    y = jnp.maximum(acc * scale_ref[...] + shift_ref[...], 0.0)
    o_ref[...] = y.reshape(toh, ow, co_tile).astype(o_ref.dtype)


def _conv_1x1_kernel(x_ref, w_ref, scale_ref, shift_ref, o_ref):
    """Pointwise conv as a plain MXU matmul tile with fused BN+ReLU."""
    acc = jnp.dot(x_ref[...], w_ref[...], preferred_element_type=jnp.float32)
    y = jnp.maximum(acc * scale_ref[...] + shift_ref[...], 0.0)
    o_ref[...] = y.astype(o_ref.dtype)


# --------------------------------------------------------------------------
# pallas_call wrappers
# --------------------------------------------------------------------------
def _conv_kxk(x, w_hwio, scale2, shift2, sh, sw, oh, ow, cout_p, out_dtype,
              cfg, row_tile=None):
    n, hp, wp, cin = x.shape
    kh, kw = int(w_hwio.shape[0]), int(w_hwio.shape[1])
    co_tile = 256 if cout_p % 256 == 0 else 128

    # Output-row band size: bound the f32 accumulator to ~acc_rows*128 lanes.
    if row_tile is not None:
        toh = max(1, min(oh, int(row_tile)))
    else:
        target = max(1, (cfg["acc_rows"] * LANE) // (co_tile * max(ow, 1)))
        toh = max(1, min(oh, target))
    n_rt = pl.cdiv(oh, toh)
    oh_p = n_rt * toh

    # Pad H so the last row band's taps stay in bounds.
    hp_needed = (oh_p - 1) * sh + kh
    if hp_needed > hp:
        x = jnp.pad(x, ((0, 0), (0, hp_needed - hp), (0, 0), (0, 0)))
        hp = hp_needed

    # Grid order: (batch, Cout tile, row band) so the weight tile is resident
    # across the innermost row-band axis and the input plane across both.
    grid = (n, cout_p // co_tile, n_rt)

    kernel = functools.partial(
        _conv_kxk_kernel, kh_size=kh, kw_size=kw, toh=toh, ow=ow,
        sh=sh, sw=sw, cin=cin)

    flops = 2 * n * oh_p * ow * cin * kh * kw * cout_p
    bytes_accessed = (x.size * x.dtype.itemsize
                      + w_hwio.size * w_hwio.dtype.itemsize
                      + n * oh_p * ow * cout_p * jnp.dtype(out_dtype).itemsize)

    out = pl.pallas_call(
        kernel,
        out_shape=jax.ShapeDtypeStruct((n, oh_p, ow, cout_p), out_dtype),
        grid=grid,
        in_specs=[
            # Full input plane per batch element (bf16): block index constant
            # across (j, r) so it is DMA'd once per batch element.
            pl.BlockSpec((None, hp, wp, cin), lambda b, j, r: (b, 0, 0, 0)),
            pl.BlockSpec((kh, kw, cin, co_tile), lambda b, j, r: (0, 0, 0, j)),
            pl.BlockSpec((1, co_tile), lambda b, j, r: (0, j)),
            pl.BlockSpec((1, co_tile), lambda b, j, r: (0, j)),
        ],
        out_specs=pl.BlockSpec((None, toh, ow, co_tile),
                               lambda b, j, r: (b, r, 0, j)),
        compiler_params=pltpu.CompilerParams(
            dimension_semantics=("parallel", "parallel", "parallel"),
            vmem_limit_bytes=cfg["vmem_limit"]),
        cost_estimate=pl.CostEstimate(flops=int(flops), transcendentals=0,
                                      bytes_accessed=int(bytes_accessed)),
    )(x, w_hwio, scale2, shift2)
    return out[:, :oh]


def _conv_1x1(x, w_hwio, scale2, shift2, sh, sw, oh, ow, cout_p, out_dtype, cfg):
    n = x.shape[0]
    cin = x.shape[-1]
    if sh > 1 or sw > 1:
        x = x[:, ::sh, ::sw, :]
    x = x[:, :oh, :ow, :]
    m = n * oh * ow
    x2 = x.reshape(m, cin)

    tile_m = min(cfg["tile_m"], _round_up(m, 8))
    m_p = _round_up(m, tile_m)
    if m_p != m:
        x2 = jnp.pad(x2, ((0, m_p - m), (0, 0)))
    w2 = w_hwio.reshape(cin, cout_p)
    co_tile = 256 if cout_p % 256 == 0 else 128

    # Cout-tile axis outermost so the (Cin, COt) weight block stays resident
    # across all row tiles.
    grid = (cout_p // co_tile, m_p // tile_m)

    flops = 2 * m_p * cin * cout_p
    bytes_accessed = (x2.size * x2.dtype.itemsize + w2.size * w2.dtype.itemsize
                      + m_p * cout_p * jnp.dtype(out_dtype).itemsize)

    out2 = pl.pallas_call(
        _conv_1x1_kernel,
        out_shape=jax.ShapeDtypeStruct((m_p, cout_p), out_dtype),
        grid=grid,
        in_specs=[
            pl.BlockSpec((tile_m, cin), lambda j, i: (i, 0)),
            pl.BlockSpec((cin, co_tile), lambda j, i: (0, j)),
            pl.BlockSpec((1, co_tile), lambda j, i: (0, j)),
            pl.BlockSpec((1, co_tile), lambda j, i: (0, j)),
        ],
        out_specs=pl.BlockSpec((tile_m, co_tile), lambda j, i: (i, j)),
        compiler_params=pltpu.CompilerParams(
            dimension_semantics=("parallel", "parallel"),
            vmem_limit_bytes=cfg["vmem_limit"]),
        cost_estimate=pl.CostEstimate(flops=int(flops), transcendentals=0,
                                      bytes_accessed=int(bytes_accessed)),
    )(x2, w2, scale2, shift2)
    return out2[:m].reshape(n, oh, ow, cout_p)


def basic_conv2d(x_nchw, weight_oihw, gamma, beta, running_mean, running_var,
                 *, stride=(1, 1), padding=(0, 0), eps=1e-3, out_dtype=None,
                 row_tile=None):
    """Pallas equivalent of BasicConv2d.forward (inference BN)."""
    sh, sw = (stride, stride) if isinstance(stride, int) else stride
    ph, pw = (padding, padding) if isinstance(padding, int) else padding

    n, cin, h, w_in = x_nchw.shape
    cout, cin_w, kh, kw = weight_oihw.shape
    assert cin == cin_w, "channel mismatch"
    if out_dtype is None:
        out_dtype = x_nchw.dtype

    scale, shift = _fold_bn(gamma, beta, running_mean, running_var, eps)

    # NCHW -> NHWC activations, OIHW -> HWIO weights; bf16 MXU operands
    # (accumulation + BN/ReLU epilogue stay f32 inside the kernels).
    x = jnp.transpose(x_nchw, (0, 2, 3, 1)).astype(jnp.bfloat16)
    w_hwio = jnp.transpose(weight_oihw, (2, 3, 1, 0)).astype(jnp.bfloat16)

    # Pad Cout to a lane-dense multiple of 128; padded channels get
    # scale=shift=0 so they produce zeros and are cropped at the end.
    cout_p = _round_up(cout, LANE)
    if cout_p != cout:
        w_hwio = jnp.pad(w_hwio, ((0, 0), (0, 0), (0, 0), (0, cout_p - cout)))
        scale = jnp.pad(scale, (0, cout_p - cout))
        shift = jnp.pad(shift, (0, cout_p - cout))
    scale2 = scale.reshape(1, cout_p).astype(jnp.float32)
    shift2 = shift.reshape(1, cout_p).astype(jnp.float32)

    # Spatial zero padding (same semantics as nn.Conv2d padding).
    if ph or pw:
        x = jnp.pad(x, ((0, 0), (ph, ph), (pw, pw), (0, 0)))
    hp, wp = h + 2 * ph, w_in + 2 * pw
    oh = (hp - kh) // sh + 1
    ow = (wp - kw) // sw + 1

    cfg = _hw_config()
    if kh == 1 and kw == 1:
        out_nhwc = _conv_1x1(x, w_hwio, scale2, shift2, sh, sw, oh, ow,
                             cout_p, out_dtype, cfg)
    else:
        out_nhwc = _conv_kxk(x, w_hwio, scale2, shift2, sh, sw, oh, ow,
                             cout_p, out_dtype, cfg, row_tile=row_tile)

    out_nhwc = out_nhwc[..., :cout]
    return jnp.transpose(out_nhwc, (0, 3, 1, 2))   # back to NCHW


# --------------------------------------------------------------------------
# Pure-JAX reference (for correctness check)
# --------------------------------------------------------------------------
def _reference(x_nchw, weight_oihw, gamma, beta, mean, var, stride, padding,
               eps=1e-3):
    sh, sw = stride
    ph, pw = padding
    y = jax.lax.conv_general_dilated(
        x_nchw.astype(jnp.float32), weight_oihw.astype(jnp.float32),
        window_strides=(sh, sw), padding=[(ph, ph), (pw, pw)],
        dimension_numbers=("NCHW", "OIHW", "NCHW"))
    scale = gamma / jnp.sqrt(var + eps)
    shift = beta - mean * scale
    y = y * scale[None, :, None, None] + shift[None, :, None, None]
    return jnp.maximum(y, 0.0)


if __name__ == "__main__":
    key = jax.random.PRNGKey(0)
    keys = jax.random.split(key, 11)

    def _nerr(a, b):
        return float(jnp.max(jnp.abs(a - b)) / (jnp.max(jnp.abs(b)) + 1e-6))

    # Example 1: 3x3 conv, stride 1, padding 1 (typical Inception branch).
    n, cin, h, w = 2, 4, 16, 16
    cout3 = 8
    x = jax.random.normal(keys[0], (n, cin, h, w), jnp.float32)
    w3 = jax.random.normal(keys[1], (cout3, cin, 3, 3), jnp.float32) * 0.2
    g3 = jax.random.uniform(keys[2], (cout3,), jnp.float32, 0.5, 1.5)
    b3 = jax.random.normal(keys[3], (cout3,), jnp.float32) * 0.1
    m3 = jax.random.normal(keys[4], (cout3,), jnp.float32) * 0.1
    v3 = jax.random.uniform(keys[5], (cout3,), jnp.float32, 0.5, 1.5)

    out3 = basic_conv2d(x, w3, g3, b3, m3, v3, stride=(1, 1), padding=(1, 1))
    out3 = jax.block_until_ready(out3)
    ref3 = _reference(x, w3, g3, b3, m3, v3, (1, 1), (1, 1))
    assert out3.shape == ref3.shape, (out3.shape, ref3.shape)
    err_a = _nerr(out3, ref3)

    # Example 2: same conv with a forced small row tile -> exercises multiple
    # output-row bands, dynamic band offsets and the H padding/crop path.
    out3b = basic_conv2d(x, w3, g3, b3, m3, v3, stride=(1, 1), padding=(1, 1),
                         row_tile=6)
    out3b = jax.block_until_ready(out3b)
    assert out3b.shape == ref3.shape, (out3b.shape, ref3.shape)
    err_b = _nerr(out3b, ref3)

    # Example 3: 1x1 pointwise conv, stride 1, padding 0.
    cout1 = 16
    w1 = jax.random.normal(keys[6], (cout1, cin, 1, 1), jnp.float32) * 0.2
    g1 = jax.random.uniform(keys[7], (cout1,), jnp.float32, 0.5, 1.5)
    b1 = jax.random.normal(keys[8], (cout1,), jnp.float32) * 0.1
    m1 = jax.random.normal(keys[9], (cout1,), jnp.float32) * 0.1
    v1 = jax.random.uniform(keys[10], (cout1,), jnp.float32, 0.5, 1.5)

    out1 = basic_conv2d(x, w1, g1, b1, m1, v1, stride=(1, 1), padding=(0, 0))
    out1 = jax.block_until_ready(out1)
    ref1 = _reference(x, w1, g1, b1, m1, v1, (1, 1), (0, 0))
    assert out1.shape == ref1.shape, (out1.shape, ref1.shape)
    err_c = _nerr(out1, ref1)

    if max(err_a, err_b, err_c) > 2e-2:
        raise AssertionError(
            f"mismatch vs reference: {err_a} {err_b} {err_c}")
    print("KERNEL_OK")
</pallas_src>

<mosaic_0001>
module attributes {stable_mosaic.version = 11 : i64} {
  func.func @_conv_kxk_kernel(%arg0: i32, %arg1: i32, %arg2: i32, %arg3: memref<1x18x18x4xbf16, #tpu.memory_space<vmem>>, %arg4: memref<3x3x4x128xbf16, #tpu.memory_space<vmem>>, %arg5: memref<1x128xf32, #tpu.memory_space<vmem>>, %arg6: memref<1x128xf32, #tpu.memory_space<vmem>>, %arg7: memref<1x16x16x128xf32, #tpu.memory_space<vmem>>) attributes {dimension_semantics = [#tpu.dimension_semantics<parallel>, #tpu.dimension_semantics<parallel>, #tpu.dimension_semantics<parallel>], iteration_bounds = array<i64: 2, 1, 1>, scalar_prefetch = 0 : i64, scratch_operands = 0 : i64, tpu.core_type = #tpu.core_type<tc>, window_params = [{transform_indices = @transform_0, window_bounds = array<i64: 1, 18, 18, 4>}, {transform_indices = @transform_1, window_bounds = array<i64: 3, 3, 4, 128>}, {transform_indices = @transform_2, window_bounds = array<i64: 1, 128>}, {transform_indices = @transform_3, window_bounds = array<i64: 1, 128>}, {transform_indices = @transform_4, window_bounds = array<i64: 1, 16, 16, 128>}]} {
    %c16_i32 = arith.constant 16 : i32
    %0 = arith.muli %arg2, %c16_i32 : i32
    %cst = arith.constant 0.000000e+00 : f32
    %1 = vector.broadcast %cst : f32 to vector<256x128xf32>
    %c0 = arith.constant 0 : index
    %2 = arith.index_cast %0 : i32 to index
    %c0_0 = arith.constant 0 : index
    %c0_1 = arith.constant 0 : index
    %3 = vector.load %arg3[%c0, %2, %c0_0, %c0_1] : memref<1x18x18x4xbf16, #tpu.memory_space<vmem>>, vector<1x18x18x4xbf16>
    %4 = vector.shape_cast %3 : vector<1x18x18x4xbf16> to vector<18x18x4xbf16>
    %5 = vector.extract_strided_slice %4 {offsets = [0, 0, 0], sizes = [16, 18, 4], strides = [1, 1, 1]} : vector<18x18x4xbf16> to vector<16x18x4xbf16>
    %6 = vector.extract_strided_slice %5 {offsets = [0, 0, 0], sizes = [16, 16, 4], strides = [1, 1, 1]} : vector<16x18x4xbf16> to vector<16x16x4xbf16>
    %7 = vector.shape_cast %6 : vector<16x16x4xbf16> to vector<256x4xbf16>
    %c0_2 = arith.constant 0 : index
    %c0_3 = arith.constant 0 : index
    %c0_4 = arith.constant 0 : index
    %c0_5 = arith.constant 0 : index
    %8 = vector.load %arg4[%c0_2, %c0_3, %c0_4, %c0_5] : memref<3x3x4x128xbf16, #tpu.memory_space<vmem>>, vector<1x1x4x128xbf16>
    %9 = vector.shape_cast %8 : vector<1x1x4x128xbf16> to vector<4x128xbf16>
    %cst_6 = arith.constant dense<0.000000e+00> : vector<256x128xf32>
    %10 = tpu.matmul %7, %9, %cst_6 {dimension_numbers = #tpu.dot_dimension_numbers<[1], [0], [0], [1], [0, 0, 1, 1], [], []>} : vector<256x4xbf16>, vector<4x128xbf16>, vector<256x128xf32> -> vector<256x128xf32>
    %11 = arith.addf %1, %10 : vector<256x128xf32>
    %12 = vector.extract_strided_slice %5 {offsets = [0, 1, 0], sizes = [16, 16, 4], strides = [1, 1, 1]} : vector<16x18x4xbf16> to vector<16x16x4xbf16>
    %13 = vector.shape_cast %12 : vector<16x16x4xbf16> to vector<256x4xbf16>
    %c0_7 = arith.constant 0 : index
    %c1 = arith.constant 1 : index
    %c0_8 = arith.constant 0 : index
    %c0_9 = arith.constant 0 : index
    %14 = vector.load %arg4[%c0_7, %c1, %c0_8, %c0_9] : memref<3x3x4x128xbf16, #tpu.memory_space<vmem>>, vector<1x1x4x128xbf16>
    %15 = vector.shape_cast %14 : vector<1x1x4x128xbf16> to vector<4x128xbf16>
    %cst_10 = arith.constant dense<0.000000e+00> : vector<256x128xf32>
    %16 = tpu.matmul %13, %15, %cst_10 {dimension_numbers = #tpu.dot_dimension_numbers<[1], [0], [0], [1], [0, 0, 1, 1], [], []>} : vector<256x4xbf16>, vector<4x128xbf16>, vector<256x128xf32> -> vector<256x128xf32>
    %17 = arith.addf %11, %16 : vector<256x128xf32>
    %18 = vector.extract_strided_slice %5 {offsets = [0, 2, 0], sizes = [16, 16, 4], strides = [1, 1, 1]} : vector<16x18x4xbf16> to vector<16x16x4xbf16>
    %19 = vector.shape_cast %18 : vector<16x16x4xbf16> to vector<256x4xbf16>
    %c0_11 = arith.constant 0 : index
    %c2 = arith.constant 2 : index
    %c0_12 = arith.constant 0 : index
    %c0_13 = arith.constant 0 : index
    %20 = vector.load %arg4[%c0_11, %c2, %c0_12, %c0_13] : memref<3x3x4x128xbf16, #tpu.memory_space<vmem>>, vector<1x1x4x128xbf16>
    %21 = vector.shape_cast %20 : vector<1x1x4x128xbf16> to vector<4x128xbf16>
    %cst_14 = arith.constant dense<0.000000e+00> : vector<256x128xf32>
    %22 = tpu.matmul %19, %21, %cst_14 {dimension_numbers = #tpu.dot_dimension_numbers<[1], [0], [0], [1], [0, 0, 1, 1], [], []>} : vector<256x4xbf16>, vector<4x128xbf16>, vector<256x128xf32> -> vector<256x128xf32>
    %23 = arith.addf %17, %22 : vector<256x128xf32>
    %24 = vector.extract_strided_slice %4 {offsets = [1, 0, 0], sizes = [16, 18, 4], strides = [1, 1, 1]} : vector<18x18x4xbf16> to vector<16x18x4xbf16>
    %25 = vector.extract_strided_slice %24 {offsets = [0, 0, 0], sizes = [16, 16, 4], strides = [1, 1, 1]} : vector<16x18x4xbf16> to vector<16x16x4xbf16>
    %26 = vector.shape_cast %25 : vector<16x16x4xbf16> to vector<256x4xbf16>
    %c1_15 = arith.constant 1 : index
    %c0_16 = arith.constant 0 : index
    %c0_17 = arith.constant 0 : index
    %c0_18 = arith.constant 0 : index
    %27 = vector.load %arg4[%c1_15, %c0_16, %c0_17, %c0_18] : memref<3x3x4x128xbf16, #tpu.memory_space<vmem>>, vector<1x1x4x128xbf16>
    %28 = vector.shape_cast %27 : vector<1x1x4x128xbf16> to vector<4x128xbf16>
    %cst_19 = arith.constant dense<0.000000e+00> : vector<256x128xf32>
    %29 = tpu.matmul %26, %28, %cst_19 {dimension_numbers = #tpu.dot_dimension_numbers<[1], [0], [0], [1], [0, 0, 1, 1], [], []>} : vector<256x4xbf16>, vector<4x128xbf16>, vector<256x128xf32> -> vector<256x128xf32>
    %30 = arith.addf %23, %29 : vector<256x128xf32>
    %31 = vector.extract_strided_slice %24 {offsets = [0, 1, 0], sizes = [16, 16, 4], strides = [1, 1, 1]} : vector<16x18x4xbf16> to vector<16x16x4xbf16>
    %32 = vector.shape_cast %31 : vector<16x16x4xbf16> to vector<256x4xbf16>
    %c1_20 = arith.constant 1 : index
    %c1_21 = arith.constant 1 : index
    %c0_22 = arith.constant 0 : index
    %c0_23 = arith.constant 0 : index
    %33 = vector.load %arg4[%c1_20, %c1_21, %c0_22, %c0_23] : memref<3x3x4x128xbf16, #tpu.memory_space<vmem>>, vector<1x1x4x128xbf16>
    %34 = vector.shape_cast %33 : vector<1x1x4x128xbf16> to vector<4x128xbf16>
    %cst_24 = arith.constant dense<0.000000e+00> : vector<256x128xf32>
    %35 = tpu.matmul %32, %34, %cst_24 {dimension_numbers = #tpu.dot_dimension_numbers<[1], [0], [0], [1], [0, 0, 1, 1], [], []>} : vector<256x4xbf16>, vector<4x128xbf16>, vector<256x128xf32> -> vector<256x128xf32>
    %36 = arith.addf %30, %35 : vector<256x128xf32>
    %37 = vector.extract_strided_slice %24 {offsets = [0, 2, 0], sizes = [16, 16, 4], strides = [1, 1, 1]} : vector<16x18x4xbf16> to vector<16x16x4xbf16>
    %38 = vector.shape_cast %37 : vector<16x16x4xbf16> to vector<256x4xbf16>
    %c1_25 = arith.constant 1 : index
    %c2_26 = arith.constant 2 : index
    %c0_27 = arith.constant 0 : index
    %c0_28 = arith.constant 0 : index
    %39 = vector.load %arg4[%c1_25, %c2_26, %c0_27, %c0_28] : memref<3x3x4x128xbf16, #tpu.memory_space<vmem>>, vector<1x1x4x128xbf16>
    %40 = vector.shape_cast %39 : vector<1x1x4x128xbf16> to vector<4x128xbf16>
    %cst_29 = arith.constant dense<0.000000e+00> : vector<256x128xf32>
    %41 = tpu.matmul %38, %40, %cst_29 {dimension_numbers = #tpu.dot_dimension_numbers<[1], [0], [0], [1], [0, 0, 1, 1], [], []>} : vector<256x4xbf16>, vector<4x128xbf16>, vector<256x128xf32> -> vector<256x128xf32>
    %42 = arith.addf %36, %41 : vector<256x128xf32>
    %43 = vector.extract_strided_slice %4 {offsets = [2, 0, 0], sizes = [16, 18, 4], strides = [1, 1, 1]} : vector<18x18x4xbf16> to vector<16x18x4xbf16>
    %44 = vector.extract_strided_slice %43 {offsets = [0, 0, 0], sizes = [16, 16, 4], strides = [1, 1, 1]} : vector<16x18x4xbf16> to vector<16x16x4xbf16>
    %45 = vector.shape_cast %44 : vector<16x16x4xbf16> to vector<256x4xbf16>
    %c2_30 = arith.constant 2 : index
    %c0_31 = arith.constant 0 : index
    %c0_32 = arith.constant 0 : index
    %c0_33 = arith.constant 0 : index
    %46 = vector.load %arg4[%c2_30, %c0_31, %c0_32, %c0_33] : memref<3x3x4x128xbf16, #tpu.memory_space<vmem>>, vector<1x1x4x128xbf16>
    %47 = vector.shape_cast %46 : vector<1x1x4x128xbf16> to vector<4x128xbf16>
    %cst_34 = arith.constant dense<0.000000e+00> : vector<256x128xf32>
    %48 = tpu.matmul %45, %47, %cst_34 {dimension_numbers = #tpu.dot_dimension_numbers<[1], [0], [0], [1], [0, 0, 1, 1], [], []>} : vector<256x4xbf16>, vector<4x128xbf16>, vector<256x128xf32> -> vector<256x128xf32>
    %49 = arith.addf %42, %48 : vector<256x128xf32>
    %50 = vector.extract_strided_slice %43 {offsets = [0, 1, 0], sizes = [16, 16, 4], strides = [1, 1, 1]} : vector<16x18x4xbf16> to vector<16x16x4xbf16>
    %51 = vector.shape_cast %50 : vector<16x16x4xbf16> to vector<256x4xbf16>
    %c2_35 = arith.constant 2 : index
    %c1_36 = arith.constant 1 : index
    %c0_37 = arith.constant 0 : index
    %c0_38 = arith.constant 0 : index
    %52 = vector.load %arg4[%c2_35, %c1_36, %c0_37, %c0_38] : memref<3x3x4x128xbf16, #tpu.memory_space<vmem>>, vector<1x1x4x128xbf16>
    %53 = vector.shape_cast %52 : vector<1x1x4x128xbf16> to vector<4x128xbf16>
    %cst_39 = arith.constant dense<0.000000e+00> : vector<256x128xf32>
    %54 = tpu.matmul %51, %53, %cst_39 {dimension_numbers = #tpu.dot_dimension_numbers<[1], [0], [0], [1], [0, 0, 1, 1], [], []>} : vector<256x4xbf16>, vector<4x128xbf16>, vector<256x128xf32> -> vector<256x128xf32>
    %55 = arith.addf %49, %54 : vector<256x128xf32>
    %56 = vector.extract_strided_slice %43 {offsets = [0, 2, 0], sizes = [16, 16, 4], strides = [1, 1, 1]} : vector<16x18x4xbf16> to vector<16x16x4xbf16>
    %57 = vector.shape_cast %56 : vector<16x16x4xbf16> to vector<256x4xbf16>
    %c2_40 = arith.constant 2 : index
    %c2_41 = arith.constant 2 : index
    %c0_42 = arith.constant 0 : index
    %c0_43 = arith.constant 0 : index
    %58 = vector.load %arg4[%c2_40, %c2_41, %c0_42, %c0_43] : memref<3x3x4x128xbf16, #tpu.memory_space<vmem>>, vector<1x1x4x128xbf16>
    %59 = vector.shape_cast %58 : vector<1x1x4x128xbf16> to vector<4x128xbf16>
    %cst_44 = arith.constant dense<0.000000e+00> : vector<256x128xf32>
    %60 = tpu.matmul %57, %59, %cst_44 {dimension_numbers = #tpu.dot_dimension_numbers<[1], [0], [0], [1], [0, 0, 1, 1], [], []>} : vector<256x4xbf16>, vector<4x128xbf16>, vector<256x128xf32> -> vector<256x128xf32>
    %61 = arith.addf %55, %60 : vector<256x128xf32>
    %c0_45 = arith.constant 0 : index
    %c0_46 = arith.constant 0 : index
    %62 = vector.load %arg5[%c0_45, %c0_46] : memref<1x128xf32, #tpu.memory_space<vmem>>, vector<1x128xf32>
    %63 = vector.broadcast %62 : vector<1x128xf32> to vector<256x128xf32>
    %64 = arith.mulf %61, %63 : vector<256x128xf32>
    %c0_47 = arith.constant 0 : index
    %c0_48 = arith.constant 0 : index
    %65 = vector.load %arg6[%c0_47, %c0_48] : memref<1x128xf32, #tpu.memory_space<vmem>>, vector<1x128xf32>
    %66 = vector.broadcast %65 : vector<1x128xf32> to vector<256x128xf32>
    %67 = arith.addf %64, %66 : vector<256x128xf32>
    %cst_49 = arith.constant 0.000000e+00 : f32
    %68 = vector.broadcast %cst_49 : f32 to vector<256x128xf32>
    %69 = arith.maximumf %67, %68 : vector<256x128xf32>
    %70 = vector.shape_cast %69 : vector<256x128xf32> to vector<16x16x128xf32>
    %c0_50 = arith.constant 0 : index
    %c0_51 = arith.constant 0 : index
    %c0_52 = arith.constant 0 : index
    %c0_53 = arith.constant 0 : index
    %71 = vector.load %arg7[%c0_50, %c0_51, %c0_52, %c0_53] : memref<1x16x16x128xf32, #tpu.memory_space<vmem>>, vector<1x16x16x128xf32>
    %72 = vector.shape_cast %71 : vector<1x16x16x128xf32> to vector<16x16x128xf32>
    %73 = vector.shape_cast %70 : vector<16x16x128xf32> to vector<1x16x16x128xf32>
    tpu.vector_store %arg7[%c0_50, %c0_51, %c0_52, %c0_53], %73 {strides = array<i32>} : memref<1x16x16x128xf32, #tpu.memory_space<vmem>>, vector<1x16x16x128xf32>,
    return
  }
  func.func @transform_0(%arg0: i32, %arg1: i32, %arg2: i32) -> (i32, i32, i32, i32) {
    %c0_i32 = arith.constant 0 : i32
    %c0_i32_0 = arith.constant 0 : i32
    %c0_i32_1 = arith.constant 0 : i32
    %c0_i32_2 = arith.constant 0 : i32
    return %arg0, %c0_i32, %c0_i32_0, %c0_i32_1 : i32, i32, i32, i32
  }
  func.func @transform_1(%arg0: i32, %arg1: i32, %arg2: i32) -> (i32, i32, i32, i32) {
    %c0_i32 = arith.constant 0 : i32
    %c0_i32_0 = arith.constant 0 : i32
    %c0_i32_1 = arith.constant 0 : i32
    %c0_i32_2 = arith.constant 0 : i32
    return %c0_i32, %c0_i32_0, %c0_i32_1, %arg1 : i32, i32, i32, i32
  }
  func.func @transform_2(%arg0: i32, %arg1: i32, %arg2: i32) -> (i32, i32) {
    %c0_i32 = arith.constant 0 : i32
    %c0_i32_0 = arith.constant 0 : i32
    return %c0_i32, %arg1 : i32, i32
  }
  func.func @transform_3(%arg0: i32, %arg1: i32, %arg2: i32) -> (i32, i32) {
    %c0_i32 = arith.constant 0 : i32
    %c0_i32_0 = arith.constant 0 : i32
    return %c0_i32, %arg1 : i32, i32
  }
  func.func @transform_4(%arg0: i32, %arg1: i32, %arg2: i32) -> (i32, i32, i32, i32) {
    %c0_i32 = arith.constant 0 : i32
    %c0_i32_0 = arith.constant 0 : i32
    return %arg0, %arg2, %c0_i32, %arg1 : i32, i32, i32, i32
  }
}

</mosaic_0001>

<bundles_post_ra>
// kernel: tpu_custom_call.1
= control target key start
LH: loop header
LB: loop body
LE: loop exit
PB: predicated region body
PF: predicated region fallthrough
CT: control target
= control target key end

     0   :  { %9 = vsyncpa [#allocation3], 0  ;;  %s4320_s0 = inlined_call_operand.vmem [shape: bf16[2,18,18,4], index: 0, kind: input, shape index: {}]   ;;  %s4321_s1 = inlined_call_operand.vmem [shape: bf16[3,3,4,128], index: 1, kind: input, shape index: {}]   ;;  %s4322_s2 = inlined_call_operand.vmem [shape: f32[1,128], index: 2, kind: input, shape index: {}]   ;;  %s4323_s3 = inlined_call_operand.vmem [shape: f32[1,128], index: 3, kind: input, shape index: {}]   ;;  %s4324_s4 = inlined_call_operand.hbm [shape: f32[2,16,16,128], index: 4, kind: output, shape index: {}]  }
   0x1   :  { %11 = vsyncpa [#allocation3 + $0x1], 0  ;;  %s3065_s15 = smov 0   ;;  %s3067_s16 = smov 0  }
   0x2   :  { %s3069_s17 = smov 0   ;;  %s3071_s18 = smov 0  }
   0x3   :  { %s3073_s19 = smov 0   ;;  %s3075_s20 = smov 0  }
   0x4 LB: > { %s2611_s21 = sadd.s32 4294967295, %s3036_s20   ;;  %s2612_s22 = sadd.s32 4294967294, %s3036_s20   ;;  %s3036_s20 = sphi %s3075_s20, %s17_s20   ;;  %s3032_s19 = sphi %s3073_s19, %s4469_s19   ;;  %s3028_s18 = sphi %s3071_s18, %s4468_s18   ;;  %s3024_s17 = sphi %s3069_s17, %s4467_s17   ;;  %s3020_s16 = sphi %s3067_s16, %s4466_s16   ;;  %s3016_s15 = sphi %s3065_s15, %s4465_s15  }
   0x5   : > { %s36_s23 = sadd.s32 1, %s3032_s19  ;;  %s151_s24 = sadd.s32 1, %s3024_s17 }
   0x6   : > { %p38_p0 = scmp.ge.s32.totalorder %s36_s23, 2  ;;  %p161_p1 = scmp.ne.s32.totalorder %s3024_s17, %s3020_s16 }
   0x7   : > { %p162_p2 = scmp.eq.s32.totalorder %s2611_s21, 1  ;;  %p167_p3 = scmp.ne.s32.totalorder %s3020_s16, %s3016_s15 }
   0x8   : > { %s4471_s23 = smov (%p38_p0, %s36_s23), 0  ;;  %p168_p5 = scmp.eq.s32.totalorder %s2612_s22, 1 }
   0x9   : > { %p3105_p4 = por %p162_p2, %p161_p1  ;;  %s144_s26 = ssub.s32 %s3032_s19, %s4471_s23 }
   0xa   : > { %p2618_p6 = scmp.ge.s32.totalorder %s3036_s20, 1  ;;  %p149_p7 = scmp.eq.s32.totalorder %s144_s26, 0 }
   0xb   : > { %p3112_p8 = por %p168_p5, %p167_p3  ;;  %p213_p9 = scmp.lt.s32.totalorder %s3036_s20, 3 }
   0xc   : > { %s3118_s28 = scalar_select %p149_p7, %s3024_s17, %s151_s24  }
   0xd   : > { %p214_p10 = pnand %p2618_p6, %p213_p9 }
   0xf   : > { %217 = sbr.rel (%p214_p10) target bundleno = 773 (0x305), region = 36 }
  0x14   : > { %v2621_v0 = vld [vmem:[%s4321_s1 + $0x2] sm:$0x3]  ;;  %vm811_vm0 = vcmask 1041408   ;;  %p249_p11 = scmp.lt.s32.totalorder %s3028_s18, 1  ;;  %v2734_v2 = vld [vmem:[%s4321_s1 + $0x4] sm:$0x3] }
  0x15   : > { %v813_v1 = vsel %vm811_vm0, %v2621_v0, 0  ;;  %v1354_v3 = vsel %vm811_vm0, %v2734_v2, 0  ;;  %v2751_v4 = vld [vmem:[%s4321_s1 + $0x6] sm:$0x3]  ;;  %v324_v5 = vld [vmem:[%s4321_s1] sm:$0x3] }
  0x16   : > { %2887 = vmatpush.bf16.msra.mxu1 %v813_v1  ;;  %2888 = vmatpush.bf16.msra.mxu2 %v813_v1  ;;  %s250_s7 = scalar_select %p249_p11, %s3028_s18, 1  ;;  %v2772_v6 = vld [vmem:[%s4321_s1 + $0x8] sm:$0x3]  ;;  %v1488_v7 = vsel %vm811_vm0, %v2751_v4, 0  ;;  %v1033_v8 = vsel %vm811_vm0, %v324_v5, 0  ;;  %vm762_vm4 = vcmask 31744  }
  0x17   : > { %2889 = vmatpush.bf16.msra.mxu3 %v813_v1  ;;  %822 = vmatpush.bf16.msra.mxu0 %v813_v1  ;;  %v1644_v9 = vsel %vm811_vm0, %v2772_v6, 0  ;;  %vm325_vm1 = vsmask.f32 3328  ;;  %vm326_vm2 = vsmask.f32 7440  ;;  %vm1140_vm5 = vcmask 1042432  }
  0x18   : > { %s2890_s14 = smul.u32 216, %s250_s7  ;;  %vm3172_vm3 = vmor %vm325_vm1, %vm326_vm2  ;;  %vm1141_vm6 = vcmask 1046532   ;;  %s246_s12 = sand.u32 1, %s3020_s16  }
  0x19   : > { %vm3475_vm7 = vmor %vm1140_vm5, %vm1141_vm6  ;;  %s2619_s21 = sshll.u32 %s246_s12, 8  ;;  %s2978_s11 = scalar_lea.hbm %s4324_s4, 512 }
  0x1a   : > { %1363 = vmatpush.bf16.msrb.mxu2 %v1354_v3  ;;  %1042 = vmatpush.bf16.msrb.mxu1 %v1033_v8  ;;  %s3145_s24 = scalar_lea.vmem %s4320_s0, %s2890_s14  ;;  %s4079_s22 = scalar_lea.vmem [#allocation2], %s2619_s21 }
  0x1b   : > { %1497 = vmatpush.bf16.msrb.mxu3 %v1488_v7  ;;  %1653 = vmatpush.bf16.msrb.mxu0 %v1644_v9  ;;  %v3148_v10 = vld [vmem:[%s3145_s24 + $0x30] sm:$0xf]  ;;  %v3151_v11 = vld [vmem:[%s3145_s24 + $0x34] sm:$0xf]  ;;  %v3154_v12 = vld [vmem:[%s3145_s24 + $0x38] sm:$0x1] }
  0x1c   : > { %v425_v13 = vshrl.u32 %v3148_v10, 16  ;;  %v428_v14 = vshll.u32 %v3148_v10, 16  ;;  %v434_v15 = vshll.u32 %v3151_v11, 16  ;;  %v438_v16 = vshrl.u32 %v3151_v11, 16  ;;  %v294_v17 = vld [vmem:[%s3145_s24 + $0x60] sm:$0xf] }
  0x1d   : > { %v444_v18 = vshll.u32 %v3154_v12, 16  ;;  %v3163_v19 = vld [vmem:[%s3145_s24 + $0x64] sm:$0xf]  ;;  %v296_v20 = vld [vmem:[%s3145_s24 + $0x68] sm:$0x1]  ;;  %v521_v21 = vshrl.u32 %v294_v17, 16 }
  0x1e   : > { %v427_v22 = vrot.slane %v425_v13, 4  ;;  %v430_v23 = vrot.slane %v428_v14, 5  ;;  %v436_v24 = vrot.slane %v434_v15, 5  ;;  %v440_v25 = vrot.slane %v438_v16, 4  ;;  %v306_v26 = vld [vmem:[%s3145_s24 + $0x90] sm:$0xf] }
  0x1f   : > { %v446_v27 = vrot.slane %v444_v18, 5  ;;  %v523_v28 = vrot.slane %v521_v21, 4  ;;  %v524_v29 = vshll.u32 %v294_v17, 16  ;;  %v530_v30 = vshll.u32 %v3163_v19, 16  ;;  %v307_v35 = vld [vmem:[%s3145_s24 + $0x94] sm:$0xf] }
  0x20   : > { %v431_v31 = vor.u32 %v430_v23, %v427_v22  ;;  %v441_v32 = vor.u32 %v440_v25, %v436_v24  ;;  %v534_v33 = vshrl.u32 %v3163_v19, 16  ;;  %v540_v34 = vshll.u32 %v296_v20, 16  ;;  %v308_v45 = vld [vmem:[%s3145_s24 + $0x98] sm:$0x1]  ;;  %v3182_v61 = vld [vmem:[%s3145_s24] sm:$0xf] }
  0x21   : > { %v526_v37 = vrot.slane %v524_v29, 5  ;;  %v532_v38 = vrot.slane %v530_v30, 5  ;;  %v617_v39 = vshrl.u32 %v306_v26, 16  ;;  %v620_v47 = vshll.u32 %v306_v26, 16  ;;  %v3189_v1 = vld [vmem:[%s3145_s24 + $0x4] sm:$0xf] }
  0x22   : > { %v432_v40 = vrot.slane %v431_v31, 4  ;;  %v442_v41 = vrot.slane %v441_v32, 4  ;;  %v536_v42 = vrot.slane %v534_v33, 4  ;;  %v542_v43 = vrot.slane %v540_v34, 5  ;;  %v3192_v2 = vld [vmem:[%s3145_s24 + $0x8] sm:$0x1] }
  0x23   : > { %v527_v44 = vor.u32 %v526_v37, %v523_v28  ;;  %v619_v46 = vrot.slane %v617_v39, 4  ;;  %v626_v48 = vshll.u32 %v307_v35, 16  ;;  %v630_v52 = vshrl.u32 %v307_v35, 16  ;;  %v3208_v23 = vld [vmem:[%s3145_s24 + $0x3c] sm:$0xf]  ;;  %s2490_s5 = sshll.u32 %s4079_s22, 4  ;;  %s2491_s5 = int_to_ptr.vmem [resolvable:$true] %s2490_s5 }
  0x24   : > { %v437_v49 = vsel %vm3172_vm3, %v432_v40, %v436_v24  ;;  %v447_v50 = vsel %vm3172_vm3, %v442_v41, %v446_v27  ;;  %v537_v51 = vor.u32 %v536_v42, %v532_v38  ;;  %v622_v56 = vrot.slane %v620_v47, 5  ;;  %v3211_v24 = vld [vmem:[%s3145_s24 + $0x40] sm:$0xf]  ;;  %v3216_v29 = vld [vmem:[%s3145_s24 + $0x44] sm:$0x1] }
  0x25   : > { %v722_v53 = vunpack.c.l.b16 %v437_v49  ;;  %v723_v54 = vunpack.c.l.b16 %v447_v50  ;;  %v528_v55 = vrot.slane %v527_v44, 4  ;;  %v628_v58 = vrot.slane %v626_v48, 5  ;;  %v3231_v47 = vld [vmem:[%s3145_s24 + $0x70] sm:$0xf] }
  0x26   : > { %v538_v57 = vrot.slane %v537_v51, 4  ;;  %v632_v59 = vrot.slane %v630_v52, 4  ;;  %v636_v60 = vshll.u32 %v308_v45, 16  ;;  %v623_v0 = vor.u32 %v622_v56, %v619_v46  ;;  %v3238_v51 = vld [vmem:[%s3145_s24 + $0x74] sm:$0x1] }
  0x27   : > { %v3184_v62 = vpack.c.b16 %v723_v54, %v722_v53  ;;  %v533_v63 = vsel %vm3172_vm3, %v528_v55, %v532_v38  ;;  %v329_v9 = vshrl.u32 %v3182_v61, 16  ;;  %v332_v13 = vshll.u32 %v3182_v61, 16  ;;  %v3224_v38 = vld [vmem:[%s3145_s24 + $0x6c] sm:$0xf] }
  0x28   : > { %v543_v3 = vsel %vm3172_vm3, %v538_v57, %v542_v43  ;;  %v730_v4 = vunpack.c.l.b16 %v533_v63  ;;  %v633_v5 = vor.u32 %v632_v59, %v628_v58  ;;  %v638_v6 = vrot.slane %v636_v60, 5 }
  0x29   : > { %2626 = vmatmul.msk.bf16.vlgmr.msra.gmra.mxu1 %vm762_vm4, %v3184_v62  ;;  %v731_v7 = vunpack.c.l.b16 %v543_v3  ;;  %v624_v8 = vrot.slane %v623_v0, 4  ;;  %v338_v15 = vshll.u32 %v3189_v1, 16  ;;  %v342_v16 = vshrl.u32 %v3189_v1, 16 }
  0x2a   : > { %v634_v14 = vrot.slane %v633_v5, 4  ;;  %v348_v17 = vshll.u32 %v3192_v2, 16  ;;  %v331_v21 = vrot.slane %v329_v9, 4  ;;  %v334_v22 = vrot.slane %v332_v13, 5  ;;  %v309_v5 = vld [vmem:[%s3145_s24 + $0x9c] sm:$0xf] }
  0x2b   : > { %v3203_v18 = vpack.c.b16 %v731_v7, %v730_v4  ;;  %v629_v20 = vsel %vm3172_vm3, %v624_v8, %v628_v58  ;;  %v340_v27 = vrot.slane %v338_v15, 5  ;;  %v344_v28 = vrot.slane %v342_v16, 4  ;;  %v310_v9 = vld [vmem:[%s3145_s24 + $0xa0] sm:$0xf] }
  0x2c   : > { %v639_v25 = vsel %vm3172_vm3, %v634_v14, %v638_v6  ;;  %v738_v26 = vunpack.c.l.b16 %v629_v20  ;;  %v335_v31 = vor.u32 %v334_v22, %v331_v21  ;;  %v350_v32 = vrot.slane %v348_v17, 5  ;;  %v311_v17 = vld [vmem:[%s3145_s24 + $0xa4] sm:$0x1] }
  0x2d   : > { %4369 = vst [vmem:[#allocation5_spill] sm:$0xff] %v3203_v18  ;;  %2630 = vmatmul.msk.bf16.vlgmr.msra.gmra.mxu2 %vm762_vm4, %v3203_v18  ;;  %v739_v30 = vunpack.c.l.b16 %v639_v25  ;;  %v345_v33 = vor.u32 %v344_v28, %v340_v27  ;;  %v449_v34 = vshrl.u32 %v3208_v23, 16  ;;  %v452_v35 = vshll.u32 %v3208_v23, 16 }
  0x2e   : > { %v458_v37 = vshll.u32 %v3211_v24, 16  ;;  %v336_v40 = vrot.slane %v335_v31, 4  ;;  %v462_v41 = vshrl.u32 %v3211_v24, 16  ;;  %v468_v42 = vshll.u32 %v3216_v29, 16 }
  0x2f   : > { %v3226_v39 = vpack.c.b16 %v739_v30, %v738_v26  ;;  %v346_v43 = vrot.slane %v345_v33, 4  ;;  %v451_v44 = vrot.slane %v449_v34, 4  ;;  %v454_v45 = vrot.slane %v452_v35, 5  ;;  %v3256_v35 = vld [vmem:[%s3145_s24 + $0xc] sm:$0xf] }
  0x30   : > { %v460_v46 = vrot.slane %v458_v37, 5  ;;  %v341_v48 = vsel %vm3172_vm3, %v336_v40, %v340_v27  ;;  %v464_v49 = vrot.slane %v462_v41, 4  ;;  %v470_v50 = vrot.slane %v468_v42, 5 }
  0x31   : > { %4370 = vst [vmem:[#allocation6_spill] sm:$0xff] %v3226_v39  ;;  %2634 = vmatmul.msk.bf16.vlgmr.msra.gmra.mxu3 %vm762_vm4, %v3226_v39  ;;  %v545_v52 = vshrl.u32 %v3224_v38, 16  ;;  %v351_v53 = vsel %vm3172_vm3, %v346_v43, %v350_v32  ;;  %v714_v54 = vunpack.c.l.b16 %v341_v48  ;;  %v455_v55 = vor.u32 %v454_v45, %v451_v44  ;;  %v3263_v43 = vld [vmem:[%s3145_s24 + $0x10] sm:$0xf]  ;;  %v3266_v48 = vld [vmem:[%s3145_s24 + $0x14] sm:$0x1] }
  0x32   : > { %v548_v56 = vshll.u32 %v3224_v38, 16  ;;  %v715_v57 = vunpack.c.l.b16 %v351_v53  ;;  %v465_v58 = vor.u32 %v464_v49, %v460_v46  ;;  %v554_v60 = vshll.u32 %v3231_v47, 16  ;;  %v3443_v39 = vld [vmem:[%s3145_s24 + $0x2c] sm:$0x1] }
  0x33   : > { %v547_v59 = vrot.slane %v545_v52, 4  ;;  %v456_v63 = vrot.slane %v455_v55, 4  ;;  %v558_v3 = vshrl.u32 %v3231_v47, 16  ;;  %v564_v4 = vshll.u32 %v3238_v51, 16 }
  0x34   : > { %v550_v0 = vrot.slane %v548_v56, 5  ;;  %v746_v6 = vpack.c.b16 %v715_v57, %v714_v54  ;;  %v466_v7 = vrot.slane %v465_v58, 4  ;;  %v556_v8 = vrot.slane %v554_v60, 5  ;;  %v3276_v58 = vld [vmem:[%s3145_s24 + $0x48] sm:$0xf] }
  0x35   : > { %v461_v13 = vsel %vm3172_vm3, %v456_v63, %v460_v46  ;;  %v560_v15 = vrot.slane %v558_v3, 4  ;;  %v566_v16 = vrot.slane %v564_v4, 5  ;;  %v641_v22 = vshrl.u32 %v309_v5, 16  ;;  %v3281_v3 = vld [vmem:[%s3145_s24 + $0x4c] sm:$0xf] }
  0x36   : > { %v551_v14 = vor.u32 %v550_v0, %v547_v59  ;;  %2622 = vmatmul.msk.bf16.vlgmr.msra.gmra.mxu0 %vm762_vm4, %v746_v6  ;;  %v471_v20 = vsel %vm3172_vm3, %v466_v7, %v470_v50  ;;  %v724_v21 = vunpack.c.l.b16 %v461_v13  ;;  %v644_v25 = vshll.u32 %v309_v5, 16 }
  0x37   : > { %v725_v26 = vunpack.c.l.b16 %v471_v20  ;;  %v561_v28 = vor.u32 %v560_v15, %v556_v8  ;;  %v650_v30 = vshll.u32 %v310_v9, 16  ;;  %v643_v31 = vrot.slane %v641_v22, 4  ;;  %v3288_v15 = vld [vmem:[%s3145_s24 + $0x50] sm:$0x1] }
  0x38   : > { %v552_v27 = vrot.slane %v551_v14, 4  ;;  %v646_v32 = vrot.slane %v644_v25, 5  ;;  %v654_v33 = vshrl.u32 %v310_v9, 16  ;;  %v660_v34 = vshll.u32 %v311_v17, 16 }
  0x39   : > { %v3258_v37 = vpack.c.b16 %v725_v26, %v724_v21  ;;  %v562_v41 = vrot.slane %v561_v28, 4  ;;  %v652_v42 = vrot.slane %v650_v30, 5  ;;  %v353_v52 = vshrl.u32 %v3256_v35, 16  ;;  %v3299_v28 = vld [vmem:[%s3145_s24 + $0x78] sm:$0xf] }
  0x3a   : > { %v557_v40 = vsel %vm3172_vm3, %v552_v27, %v556_v8  ;;  %v647_v45 = vor.u32 %v646_v32, %v643_v31  ;;  %v656_v46 = vrot.slane %v654_v33, 4  ;;  %v662_v50 = vrot.slane %v660_v34, 5  ;;  %v3303_v34 = vld [vmem:[%s3145_s24 + $0x7c] sm:$0xf] }
  0x3b   : > { %v732_v44 = vunpack.c.l.b16 %v557_v40  ;;  %2627 = vmatmul.msk.bf16.gmra.mxu1 %vm762_vm4, %v3258_v37  ;;  %v567_v49 = vsel %vm3172_vm3, %v562_v41, %v566_v16  ;;  %v356_v53 = vshll.u32 %v3256_v35, 16  ;;  %v362_v57 = vshll.u32 %v3263_v43, 16 }
  0x3c   : > { %v733_v54 = vunpack.c.l.b16 %v567_v49  ;;  %v648_v55 = vrot.slane %v647_v45, 4  ;;  %v657_v56 = vor.u32 %v656_v46, %v652_v42  ;;  %v355_v59 = vrot.slane %v353_v52, 4 }
  0x3d   : > { %v358_v60 = vrot.slane %v356_v53, 5  ;;  %v366_v63 = vshrl.u32 %v3263_v43, 16  ;;  %v372_v0 = vshll.u32 %v3266_v48, 16  ;;  %v364_v7 = vrot.slane %v362_v57, 5 }
  0x3e   : > { %v3283_v4 = vpack.c.b16 %v733_v54, %v732_v44  ;;  %v653_v5 = vsel %vm3172_vm3, %v648_v55, %v652_v42  ;;  %v658_v6 = vrot.slane %v657_v56, 4  ;;  %v473_v17 = vshrl.u32 %v3276_v58, 16 }
  0x3f   : > { %v740_v8 = vunpack.c.l.b16 %v653_v5  ;;  %v359_v9 = vor.u32 %v358_v60, %v355_v59  ;;  %v368_v13 = vrot.slane %v366_v63, 4  ;;  %v374_v14 = vrot.slane %v372_v0, 5 }
  0x40   : > { %2631 = vmatmul.msk.bf16.gmra.mxu2 %vm762_vm4, %v3283_v4  ;;  %v663_v16 = vsel %vm3172_vm3, %v658_v6, %v662_v50  ;;  %v476_v20 = vshll.u32 %v3276_v58, 16  ;;  %v482_v21 = vshll.u32 %v3281_v3, 16  ;;  %v486_v27 = vshrl.u32 %v3281_v3, 16  ;;  %v3310_v50 = vld [vmem:[%s3145_s24 + $0x80] sm:$0x1] }
  0x41   : > { %v741_v22 = vunpack.c.l.b16 %v663_v16  ;;  %v360_v25 = vrot.slane %v359_v9, 4  ;;  %v369_v26 = vor.u32 %v368_v13, %v364_v7  ;;  %v475_v30 = vrot.slane %v473_v17, 4  ;;  %v3329_v16 = vld [vmem:[%s3145_s24 + $0xac] sm:$0xf]  ;;  %v3332_v17 = vld [vmem:[%s3145_s24 + $0xb0] sm:$0x1] }
  0x42   : > { %v478_v31 = vrot.slane %v476_v20, 5  ;;  %v484_v32 = vrot.slane %v482_v21, 5  ;;  %v492_v33 = vshll.u32 %v3288_v15, 16  ;;  %v488_v44 = vrot.slane %v486_v27, 4  ;;  %4373 = vst [vmem:[#allocation9_spill] sm:$0xff] %v3329_v16 }
  0x43   : > { %v3305_v40 = vpack.c.b16 %v741_v22, %v740_v8  ;;  %v365_v41 = vsel %vm3172_vm3, %v360_v25, %v364_v7  ;;  %v370_v42 = vrot.slane %v369_v26, 4  ;;  %v569_v52 = vshrl.u32 %v3299_v28, 16  ;;  %v3322_v8 = vld [vmem:[%s3145_s24 + $0xa8] sm:$0xf]  ;;  %4374 = vst [vmem:[#allocation10_spill] sm:$0xff] %v3332_v17 }
  0x44   : > { %v716_v45 = vunpack.c.l.b16 %v365_v41  ;;  %v479_v46 = vor.u32 %v478_v31, %v475_v30  ;;  %v494_v49 = vrot.slane %v492_v33, 5  ;;  %v489_v54 = vor.u32 %v488_v44, %v484_v32  ;;  %4372 = vst [vmem:[#allocation8_spill] sm:$0xff] %v3322_v8 }
  0x45   : > { %4371 = vst [vmem:[#allocation7_spill] sm:$0xff] %v3305_v40  ;;  %2635 = vmatmul.msk.bf16.gmra.mxu3 %vm762_vm4, %v3305_v40  ;;  %v375_v53 = vsel %vm3172_vm3, %v370_v42, %v374_v14  ;;  %v572_v55 = vshll.u32 %v3299_v28, 16  ;;  %v578_v56 = vshll.u32 %v3303_v34, 16  ;;  %v571_v60 = vrot.slane %v569_v52, 4  ;;  %v3346_v52 = vld [vmem:[%s3145_s24 + $0x18] sm:$0xf] }
  0x46   : > { %v717_v57 = vunpack.c.l.b16 %v375_v53  ;;  %v480_v59 = vrot.slane %v479_v46, 4  ;;  %v582_v63 = vshrl.u32 %v3303_v34, 16  ;;  %v490_v0 = vrot.slane %v489_v54, 4  ;;  %v3432_v40 = vld [vmem:[%s3145_s24 + $0x24] sm:$0xf] }
  0x47   : > { %v574_v5 = vrot.slane %v572_v55, 5  ;;  %v580_v6 = vrot.slane %v578_v56, 5  ;;  %v588_v7 = vshll.u32 %v3310_v50, 16  ;;  %v665_v30 = vshrl.u32 %v3322_v8, 16  ;;  %v3351_v56 = vld [vmem:[%s3145_s24 + $0x1c] sm:$0xf] }
  0x48   : > { %v3324_v9 = vpack.c.b16 %v717_v57, %v716_v45  ;;  %v485_v13 = vsel %vm3172_vm3, %v480_v59, %v484_v32  ;;  %v584_v14 = vrot.slane %v582_v63, 4  ;;  %v495_v20 = vsel %vm3172_vm3, %v490_v0, %v494_v49  ;;  %v3354_v57 = vld [vmem:[%s3145_s24 + $0x20] sm:$0x1] }
  0x49   : > { %v726_v21 = vunpack.c.l.b16 %v485_v13  ;;  %v575_v22 = vor.u32 %v574_v5, %v571_v60  ;;  %v590_v25 = vrot.slane %v588_v7, 5  ;;  %v727_v26 = vunpack.c.l.b16 %v495_v20 }
  0x4a   : > { %2623 = vmatmul.msk.bf16.gmra.mxu0 %vm762_vm4, %v3324_v9  ;;  %v585_v27 = vor.u32 %v584_v14, %v580_v6  ;;  %v668_v31 = vshll.u32 %v3322_v8, 16  ;;  %v674_v33 = vshll.u32 %v3329_v16, 16  ;;  %v678_v41 = vshrl.u32 %v3329_v16, 16 }
  0x4b   : > { %v576_v32 = vrot.slane %v575_v22, 4  ;;  %v684_v42 = vshll.u32 %v3332_v17, 16  ;;  %v3343_v44 = vpack.c.b16 %v727_v26, %v726_v21  ;;  %v667_v46 = vrot.slane %v665_v30, 4  ;;  %v3366_v26 = vld [vmem:[%s3145_s24 + $0x54] sm:$0xf] }
  0x4c   : > { %v586_v45 = vrot.slane %v585_v27, 4  ;;  %v670_v49 = vrot.slane %v668_v31, 5  ;;  %v676_v54 = vrot.slane %v674_v33, 5  ;;  %v680_v55 = vrot.slane %v678_v41, 4  ;;  %v3410_v17 = vld [vmem:[%s3145_s24 + $0xb4] sm:$0xf] }
  0x4d   : > { %4375 = vst [vmem:[#allocation11_spill] sm:$0xff] %v3343_v44  ;;  %v581_v53 = vsel %vm3172_vm3, %v576_v32, %v580_v6  ;;  %2628 = vmatmul.msk.bf16.gmra.mxu1 %vm762_vm4, %v3343_v44  ;;  %v686_v0 = vrot.slane %v684_v42, 5  ;;  %v377_v6 = vshrl.u32 %v3346_v52, 16  ;;  %v380_v13 = vshll.u32 %v3346_v52, 16  ;;  %v3371_v32 = vld [vmem:[%s3145_s24 + $0x58] sm:$0xf] }
  0x4e   : > { %v591_v59 = vsel %vm3172_vm3, %v586_v45, %v590_v25  ;;  %v734_v60 = vunpack.c.l.b16 %v581_v53  ;;  %v671_v63 = vor.u32 %v670_v49, %v667_v46  ;;  %v681_v7 = vor.u32 %v680_v55, %v676_v54  ;;  %v3376_v46 = vld [vmem:[%s3145_s24 + $0x5c] sm:$0x1]  ;;  %4378 = vst [vmem:[#allocation14_spill] sm:$0xff] %v3410_v17 }
  0x4f   : > { %v735_v5 = vunpack.c.l.b16 %v591_v59  ;;  %v386_v20 = vshll.u32 %v3351_v56, 16  ;;  %v390_v21 = vshrl.u32 %v3351_v56, 16  ;;  %v396_v22 = vshll.u32 %v3354_v57, 16 }
  0x50   : > { %v672_v14 = vrot.slane %v671_v63, 4  ;;  %v682_v27 = vrot.slane %v681_v7, 4  ;;  %v379_v30 = vrot.slane %v377_v6, 4  ;;  %v382_v31 = vrot.slane %v380_v13, 5  ;;  %v3386_v7 = vld [vmem:[%s3145_s24 + $0x84] sm:$0xf] }
  0x51   : > { %v3368_v25 = vpack.c.b16 %v735_v5, %v734_v60  ;;  %v388_v41 = vrot.slane %v386_v20, 5  ;;  %v392_v42 = vrot.slane %v390_v21, 4  ;;  %v398_v45 = vrot.slane %v396_v22, 5  ;;  %4376 = vst [vmem:[#allocation12_spill] sm:$0xff] %v3386_v7 }
  0x52   : > { %v677_v33 = vsel %vm3172_vm3, %v672_v14, %v676_v54  ;;  %v687_v49 = vsel %vm3172_vm3, %v682_v27, %v686_v0  ;;  %v383_v55 = vor.u32 %v382_v31, %v379_v30  ;;  %v497_v59 = vshrl.u32 %v3366_v26, 16  ;;  %v3393_v30 = vld [vmem:[%s3145_s24 + $0x88] sm:$0xf] }
  0x53   : > { %2632 = vmatmul.msk.bf16.gmra.mxu2 %vm762_vm4, %v3368_v25  ;;  %v742_v53 = vunpack.c.l.b16 %v677_v33  ;;  %v743_v60 = vunpack.c.l.b16 %v687_v49  ;;  %v393_v63 = vor.u32 %v392_v42, %v388_v41  ;;  %v500_v54 = vshll.u32 %v3366_v26, 16  ;;  %v3398_v49 = vld [vmem:[%s3145_s24 + $0x8c] sm:$0x1] }
  0x54   : > { %v506_v5 = vshll.u32 %v3371_v32, 16  ;;  %v384_v6 = vrot.slane %v383_v55, 4  ;;  %v499_v13 = vrot.slane %v497_v59, 4  ;;  %v510_v14 = vshrl.u32 %v3371_v32, 16 }
  0x55   : > { %v516_v0 = vshll.u32 %v3376_v46, 16  ;;  %v3390_v20 = vpack.c.b16 %v743_v60, %v742_v53  ;;  %v394_v21 = vrot.slane %v393_v63, 4  ;;  %v502_v22 = vrot.slane %v500_v54, 5 }
  0x56   : > { %v508_v27 = vrot.slane %v506_v5, 5  ;;  %v389_v31 = vsel %vm3172_vm3, %v384_v6, %v388_v41  ;;  %v512_v33 = vrot.slane %v510_v14, 4  ;;  %v593_v55 = vshrl.u32 %v3386_v7, 16 }
  0x57   : > { %4377 = vst [vmem:[#allocation13_spill] sm:$0xff] %v3390_v20  ;;  %v518_v42 = vrot.slane %v516_v0, 5  ;;  %2636 = vmatmul.msk.bf16.gmra.mxu3 %vm762_vm4, %v3390_v20  ;;  %v399_v53 = vsel %vm3172_vm3, %v394_v21, %v398_v45  ;;  %v718_v59 = vunpack.c.l.b16 %v389_v31  ;;  %v503_v60 = vor.u32 %v502_v22, %v499_v13  ;;  %v3415_v22 = vld [vmem:[%s3145_s24 + $0xb8] sm:$0xf] }
  0x58   : > { %v596_v63 = vshll.u32 %v3386_v7, 16  ;;  %v719_v54 = vunpack.c.l.b16 %v399_v53  ;;  %v513_v41 = vor.u32 %v512_v33, %v508_v27  ;;  %v595_v5 = vrot.slane %v593_v55, 4  ;;  %4379 = vst [vmem:[#allocation15_spill] sm:$0xff] %v3415_v22 }
  0x59   : > { %v602_v6 = vshll.u32 %v3393_v30, 16  ;;  %v504_v14 = vrot.slane %v503_v60, 4  ;;  %v606_v8 = vshrl.u32 %v3393_v30, 16  ;;  %v612_v20 = vshll.u32 %v3398_v49, 16  ;;  %v3420_v60 = vld [vmem:[%s3145_s24 + $0xbc] sm:$0x1] }
  0x5a   : > { %v598_v0 = vrot.slane %v596_v63, 5  ;;  %v3412_v45 = vpack.c.b16 %v719_v54, %v718_v59  ;;  %v514_v21 = vrot.slane %v513_v41, 4  ;;  %4380 = vst [vmem:[#allocation16_spill] sm:$0xff] %v3420_v60  ;;  %v689_v54 = vshrl.u32 %v3410_v17, 16 }
  0x5b   : > { %v604_v13 = vrot.slane %v602_v6, 5  ;;  %v509_v31 = vsel %vm3172_vm3, %v504_v14, %v508_v27  ;;  %v608_v55 = vrot.slane %v606_v8, 4  ;;  %v614_v53 = vrot.slane %v612_v20, 5 }
  0x5c   : > { %v599_v33 = vor.u32 %v598_v0, %v595_v5  ;;  %2624 = vmatmul.msk.bf16.gmra.mxu0 %vm762_vm4, %v3412_v45  ;;  %v519_v59 = vsel %vm3172_vm3, %v514_v21, %v518_v42  ;;  %v728_v63 = vunpack.c.l.b16 %v509_v31  ;;  %v692_v41 = vshll.u32 %v3410_v17, 16 }
  0x5d   : > { %v729_v6 = vunpack.c.l.b16 %v519_v59  ;;  %v609_v5 = vor.u32 %v608_v55, %v604_v13  ;;  %v698_v8 = vshll.u32 %v3415_v22, 16  ;;  %v691_v20 = vrot.slane %v689_v54, 4 }
  0x5e   : > { %v600_v27 = vrot.slane %v599_v33, 4  ;;  %v694_v14 = vrot.slane %v692_v41, 5  ;;  %v702_v0 = vshrl.u32 %v3415_v22, 16  ;;  %v708_v16 = vshll.u32 %v3420_v60, 16  ;;  %v3439_v33 = vld [vmem:[%s3145_s24 + $0x28] sm:$0xf] }
  0x5f   : > { %v3434_v42 = vpack.c.b16 %v729_v6, %v728_v63  ;;  %v610_v31 = vrot.slane %v609_v5, 4  ;;  %v700_v59 = vrot.slane %v698_v8, 5  ;;  %v1148_v55 = vrot.slane %v3192_v2, 5 }
  0x60   : > { %v605_v21 = vsel %vm3172_vm3, %v600_v27, %v604_v13  ;;  %v695_v54 = vor.u32 %v694_v14, %v691_v20  ;;  %v704_v41 = vrot.slane %v702_v0, 4  ;;  %v710_v6 = vrot.slane %v708_v16, 5 }
  0x61   : > { %4381 = vst [vmem:[#allocation17_spill] sm:$0xff] %v3434_v42  ;;  %v736_v17 = vunpack.c.l.b16 %v605_v21  ;;  %2629 = vmatmul.msk.bf16.gmra.mxu1 %vm762_vm4, %v3434_v42  ;;  %v615_v63 = vsel %vm3172_vm3, %v610_v31, %v614_v53  ;;  %v401_v13 = vshrl.u32 %v3432_v40, 16  ;;  %v404_v27 = vshll.u32 %v3432_v40, 16 }
  0x62   : > { %v737_v5 = vunpack.c.l.b16 %v615_v63  ;;  %v696_v8 = vrot.slane %v695_v54, 4  ;;  %v705_v60 = vor.u32 %v704_v41, %v700_v59  ;;  %v410_v2 = vshll.u32 %v3439_v33, 16  ;;  %v2807_v54 = vld [vmem:[%s4321_s1 + $0xc] sm:$0x3]  ;;  %v2828_v41 = vld [vmem:[%s4321_s1 + $0xe] sm:$0x3] }
  0x63   : > { %v403_v20 = vrot.slane %v401_v13, 4  ;;  %v406_v14 = vrot.slane %v404_v27, 5  ;;  %v414_v0 = vshrl.u32 %v3439_v33, 16  ;;  %v420_v21 = vshll.u32 %v3443_v39, 16 }
  0x64   : > { %v3454_v22 = vpack.c.b16 %v737_v5, %v736_v17  ;;  %v701_v16 = vsel %vm3172_vm3, %v696_v8, %v700_v59  ;;  %v706_v53 = vrot.slane %v705_v60, 4  ;;  %v412_v31 = vrot.slane %v410_v2, 5  ;;  %v2790_v17 = vld [vmem:[%s4321_s1 + $0xa] sm:$0x3]  ;;  %v2846_v60 = vld [vmem:[%s4321_s1 + $0x10] sm:$0x3] }
  0x65   : > { %v744_v63 = vunpack.c.l.b16 %v701_v16  ;;  %v407_v13 = vor.u32 %v406_v14, %v403_v20  ;;  %v416_v27 = vrot.slane %v414_v0, 4  ;;  %v422_v7 = vrot.slane %v420_v21, 5 }
  0x66   : > { %4382 = vst [vmem:[#allocation18_spill] sm:$0xff] %v3454_v22  ;;  %2633 = vmatmul.msk.bf16.gmra.mxu2 %vm762_vm4, %v3454_v22  ;;  %v711_v59 = vsel %vm3172_vm3, %v706_v53, %v710_v6  ;;  %v2718_v5 = vrot.slane %v3182_v61, 9  ;;  %v1145_v0 = vrot.slane %v3189_v1, 5  ;;  %v1918_v21 = vsel %vm811_vm0, %v2807_v54, 0 }
  0x67   : > { %v745_v8 = vunpack.c.l.b16 %v711_v59  ;;  %v408_v2 = vrot.slane %v407_v13, 4  ;;  %v417_v20 = vor.u32 %v416_v27, %v412_v31  ;;  %v2074_v16 = vsel %vm811_vm0, %v2828_v41, 0  ;;  %1927 = vmatpush.bf16.msra.mxu2 %v1918_v21  ;;  %v2869_v21 = vld [vmem:[%s3145_s24 + $0xc] sm:$0xff] }
  0x68   : > { %v1784_v22 = vsel %vm811_vm0, %v2790_v17, 0  ;;  %v2214_v6 = vsel %vm811_vm0, %v2846_v60, 0  ;;  %v1146_v27 = vsel %vm3475_vm7, %v2718_v5, %v1145_v0  ;;  %2083 = vmatpush.bf16.msra.mxu3 %v2074_v16  ;;  %v1147_v54 = vrot.slane %v1145_v0, 4 }
  0x69   : > { %v3484_v53 = vpack.c.b16 %v745_v8, %v744_v63  ;;  %v413_v61 = vsel %vm3172_vm3, %v408_v2, %v412_v31  ;;  %v418_v13 = vrot.slane %v417_v20, 4  ;;  %1793 = vmatpush.bf16.msra.mxu1 %v1784_v22  ;;  %2223 = vmatpush.bf16.msra.mxu0 %v2214_v6  ;;  %v2719_v41 = vrot.slane %v3256_v35, 9  ;;  %v2868_v22 = vld [vmem:[%s3145_s24] sm:$0xff]  ;;  %v3521_v6 = vld [vmem:[%s3145_s24 + $0x18] sm:$0xff] }
  0x6a   : > { %v720_v1 = vunpack.c.l.b16 %v413_v61  ;;  %v1257_v31 = vunpack.c.l.b16 %v1146_v27  ;;  %v1152_v17 = vrot.slane %v3263_v43, 5  ;;  %v1155_v60 = vrot.slane %v3266_v48, 5 }
  0x6b   : > { %2637 = vmatmul.msk.bf16.gmra.mxu3 %vm762_vm4, %v3484_v53  ;;  %v423_v63 = vsel %vm3172_vm3, %v418_v13, %v422_v7  ;;  %v1149_v5 = vsel %vm3475_vm7, %v1147_v54, %v1148_v55  ;;  %v1159_v16 = vrot.slane %v3351_v56, 5  ;;  %v2720_v61 = vrot.slane %v3346_v52, 9 }
  0x6c   : > { %v721_v59 = vunpack.c.l.b16 %v423_v63  ;;  %v1258_v8 = vunpack.c.l.b16 %v1149_v5  ;;  %v1153_v35 = vsel %vm3475_vm7, %v2719_v41, %v1152_v17  ;;  %v1154_v2 = vrot.slane %v1152_v17, 4  ;;  %v3541_v41 = vld [vmem:[%s3145_s24 + $0x24] sm:$0xff] }
  0x6d   : > { %v1259_v7 = vunpack.c.l.b16 %v1153_v35  ;;  %v1161_v13 = vrot.slane %v1159_v16, 4  ;;  %v1162_v27 = vrot.slane %v3354_v57, 5  ;;  %v1166_v57 = vrot.slane %v3439_v33, 5 }
  0x6e   : > { %v3502_v20 = vpack.c.b16 %v721_v59, %v720_v1  ;;  %v1289_v0 = vpack.c.b16 %v1258_v8, %v1257_v31  ;;  %v1156_v43 = vsel %vm3475_vm7, %v1154_v2, %v1155_v60  ;;  %v2721_v63 = vrot.slane %v3432_v40, 9  ;;  %v3563_v8 = vld [vmem:[%s3145_s24 + $0x30] sm:$0xff] }
  0x6f   : > { %v1260_v48 = vunpack.c.l.b16 %v1156_v43  ;;  %v1163_v56 = vsel %vm3475_vm7, %v1161_v13, %v1162_v27  ;;  %v1168_v31 = vrot.slane %v1166_v57, 4  ;;  %v1169_v17 = vrot.slane %v3443_v39, 5  ;;  %v3591_v27 = vld [vmem:[%s3145_s24 + $0x3c] sm:$0xff] }
  0x70   : > { %2625 = vmatmul.msk.bf16.gmra.mxu0 %vm762_vm4, %v3502_v20  ;;  %v1262_v54 = vunpack.c.l.b16 %v1163_v56  ;;  %v1167_v60 = vsel %vm3475_vm7, %v2721_v63, %v1166_v57  ;;  %v1173_v39 = vrot.slane %v3151_v11, 5  ;;  %v2722_v35 = vrot.slane %v3148_v10, 9 }
  0x71   : > { %2702 = vmatmul.msk.bf16.vlgmr.msrb.gmra.mxu1 %vm762_vm4, %v2868_v22  ;;  %v3509_v55 = vpack.c.b16 %v1260_v48, %v1259_v7  ;;  %v1170_v33 = vsel %vm3475_vm7, %v1168_v31, %v1169_v17  ;;  %v1263_v59 = vunpack.c.l.b16 %v1167_v60  ;;  %v1176_v7 = vrot.slane %v3154_v12, 5 }
  0x72   : > { %v1264_v5 = vunpack.c.l.b16 %v1170_v33  ;;  %v1175_v2 = vrot.slane %v1173_v39, 4  ;;  %v1180_v13 = vrot.slane %v3211_v24, 5  ;;  %v2723_v56 = vrot.slane %v3208_v23, 9 }
  0x74   : > { %v3555_v40 = vpack.c.b16 %v1264_v5, %v1263_v59  ;;  %v1177_v11 = vsel %vm3475_vm7, %v1175_v2, %v1176_v7  ;;  %v1181_v24 = vsel %vm3475_vm7, %v2723_v56, %v1180_v13  ;;  %v1187_v5 = vrot.slane %v3281_v3, 5 }
  0x75   : > { %v1267_v23 = vunpack.c.l.b16 %v1181_v24  ;;  %v2724_v7 = vrot.slane %v3276_v58, 9  ;;  %v1194_v24 = vrot.slane %v3371_v32, 5 }
  0x76   : > { %2735 = vmatmul.msk.bf16.vlgmr.msrb.gmra.mxu2 %vm762_vm4, %v1289_v0  ;;  %v1174_v0 = vsel %vm3475_vm7, %v2722_v35, %v1173_v39  ;;  %v3625_v35 = vld [vmem:[%s3145_s24 + $0x48] sm:$0xff] }
  0x77   : > { %v1265_v48 = vunpack.c.l.b16 %v1174_v0  ;;  %4387 = vst [vmem:[#allocation21_spill] sm:$0xff] %v3625_v35  ;;  %v1189_v0 = vrot.slane %v1187_v5, 4 }
  0x7b   : > { %2756 = vmatmul.msk.bf16.vlgmr.msrb.gmra.mxu3 %vm762_vm4, %v2869_v21 }
  0x80   : > { %2773 = vmatmul.msk.bf16.vlgmr.msrb.gmra.mxu0 %vm762_vm4, %v3324_v9  ;;  %v1160_v9 = vsel %vm3475_vm7, %v2720_v61, %v1159_v16 }
  0x81   : > { %2703 = vmatmul.msk.bf16.gmra.mxu1 %vm762_vm4, %v2869_v21  ;;  %v1261_v1 = vunpack.c.l.b16 %v1160_v9  ;;  %v1266_v21 = vunpack.c.l.b16 %v1177_v11  ;;  %v1190_v11 = vrot.slane %v3288_v15, 5 }
  0x83   : > { %v3535_v52 = vpack.c.b16 %v1262_v54, %v1261_v1  ;;  %v3583_v12 = vpack.c.b16 %v1266_v21, %v1265_v48  ;;  %v1182_v1 = vrot.slane %v1180_v13, 4  ;;  %v1183_v54 = vrot.slane %v3216_v29, 5 }
  0x84   : > { %v1188_v21 = vsel %vm3475_vm7, %v2724_v7, %v1187_v5  ;;  %v1191_v13 = vsel %vm3475_vm7, %v1189_v0, %v1190_v11  ;;  %v2725_v5 = vrot.slane %v3366_v26, 9  ;;  %v1196_v7 = vrot.slane %v1194_v24, 4 }
  0x85   : > { %v1184_v63 = vsel %vm3475_vm7, %v1182_v1, %v1183_v54  ;;  %v1269_v56 = vunpack.c.l.b16 %v1188_v21  ;;  %v1270_v1 = vunpack.c.l.b16 %v1191_v13  ;;  %v1197_v0 = vrot.slane %v3376_v46, 5 }
  0x86   : > { %2736 = vmatmul.msk.bf16.gmra.mxu2 %vm762_vm4, %v3509_v55  ;;  %v1268_v60 = vunpack.c.l.b16 %v1184_v63  ;;  %v1195_v32 = vsel %vm3475_vm7, %v2725_v5, %v1194_v24  ;;  %v1201_v5 = vrot.slane %v3163_v19, 5 }
  0x87   : > { %v3649_v54 = vpack.c.b16 %v1270_v1, %v1269_v56  ;;  %v1198_v13 = vsel %vm3475_vm7, %v1196_v7, %v1197_v0  ;;  %v1271_v56 = vunpack.c.l.b16 %v1195_v32  ;;  %v2950_v32 = vld [vmem:[%s3145_s24 + $0x68] sm:$0x1] }
  0x88   : > { %v3615_v33 = vpack.c.b16 %v1268_v60, %v1267_v23  ;;  %v3659_v60 = vld [vmem:[%s3145_s24 + $0x54] sm:$0xff]  ;;  %v1272_v46 = vunpack.c.l.b16 %v1198_v13  ;;  %v1204_v13 = vrot.slane %v2950_v32, 5 }
  0x89   : > { %4390 = vst [vmem:[#allocation24_spill] sm:$0xff] %v3649_v54 }
  0x8a   : > { %4391 = vst [vmem:[#allocation25_spill] sm:$0xff] %v3659_v60 }
  0x8b   : > { %2757 = vmatmul.msk.bf16.gmra.mxu3 %vm762_vm4, %v3521_v6 }
  0x90   : > { %2774 = vmatmul.msk.bf16.gmra.mxu0 %vm762_vm4, %v3412_v45 }
  0x91   : > { %2704 = vmatmul.msk.bf16.gmra.mxu1 %vm762_vm4, %v3521_v6 }
  0x96   : > { %2737 = vmatmul.msk.bf16.gmra.mxu2 %vm762_vm4, %v3535_v52 }
  0x9b   : > { %2758 = vmatmul.msk.bf16.gmra.mxu3 %vm762_vm4, %v3541_v41 }
  0xa0   : > { %2775 = vmatmul.msk.bf16.gmra.mxu0 %vm762_vm4, %v3502_v20 }
  0xa1   : > { %2705 = vmatmul.msk.bf16.gmra.mxu1 %vm762_vm4, %v3541_v41 }
  0xa6   : > { %v3558_v22 = vpop.f32.mrf.mxu1  ;;  %2738 = vmatmul.msk.bf16.gmra.mxu2 %vm762_vm4, %v3555_v40 }
  0xab   : > { %2759 = vmatmul.msk.bf16.gmra.mxu3 %vm762_vm4, %v3563_v8 }
  0xae   : > { %v3573_v43 = vpop.f32.mrf.mxu1 }
  0xb0   : > { %v3575_v16 = vpop.f32.mrf.mxu2  ;;  %2776 = vmatmul.msk.bf16.gmra.mxu0 %vm762_vm4, %v3184_v62 }
  0xb1   : > { %2706 = vmatmul.msk.bf16.gmra.mxu1 %vm762_vm4, %v3563_v8 }
  0xb3   : > { %v3581_v10 = vpop.f32.mrf.mxu0 }
  0xb4   : > { %v3585_v61 = vpop.f32.mrf.mxu3 }
  0xb5   : > { %4385 = vst [vmem:[#allocation19_spill] sm:$0xff] %v3585_v61 }
  0xb6   : > { %2739 = vmatmul.msk.bf16.gmra.mxu2 %vm762_vm4, %v3583_v12 }
  0xb8   : > { %v3593_v9 = vpop.f32.mrf.mxu1  ;;  %v3597_v57 = vpop.f32.mrf.mxu2 }
  0xbb   : > { %2760 = vmatmul.msk.bf16.gmra.mxu3 %vm762_vm4, %v3591_v27  ;;  %v3605_v31 = vpop.f32.mrf.mxu0 }
  0xbc   : > { %v3607_v17 = vpop.f32.mrf.mxu3 }
  0xbd   : > { %4386 = vst [vmem:[#allocation20_spill] sm:$0xff] %v3607_v17 }
  0xc0   : > { %2777 = vmatmul.msk.bf16.gmra.mxu0 %vm762_vm4, %v3258_v37  ;;  %v3611_v29 = vpop.f32.mrf.mxu1 }
  0xc1   : > { %2707 = vmatmul.msk.bf16.gmra.mxu1 %vm762_vm4, %v3591_v27 }
  0xc3   : > { %v3617_v59 = vpop.f32.mrf.mxu2 }
  0xc6   : > { %2740 = vmatmul.msk.bf16.gmra.mxu2 %vm762_vm4, %v3615_v33 }
  0xc7   : > { %v3620_v39 = vpop.f32.mrf.mxu0 }
  0xc8   : > { %v3627_v2 = vpop.f32.mrf.mxu3 }
  0xc9   : > { %4388 = vst [vmem:[#allocation22_spill] sm:$0xff] %v3627_v2 }
  0xca   : > { %v3631_v48 = vpop.f32.mrf.mxu1 }
  0xcb   : > { %2761 = vmatmul.msk.bf16.gmra.mxu3 %vm762_vm4, %v3625_v35  ;;  %v3635_v3 = vpop.f32.mrf.mxu2 }
  0xcf   : > { %v3641_v58 = vpop.f32.mrf.mxu0 }
  0xd0   : > { %2778 = vmatmul.msk.bf16.gmra.mxu0 %vm762_vm4, %v3343_v44  ;;  %v3645_v15 = vpop.f32.mrf.mxu3 }
  0xd1   : > { %4389 = vst [vmem:[#allocation23_spill] sm:$0xff] %v3645_v15  ;;  %2708 = vmatmul.msk.bf16.gmra.mxu1 %vm762_vm4, %v3625_v35  ;;  %v3694_v15 = vld [vmem:[%s3145_s24 + $0x60] sm:$0xff] }
  0xd2   : > { %v3652_v63 = vpop.f32.mrf.mxu1  ;;  %4395 = vst [vmem:[#allocation29_spill] sm:$0xff] %v3694_v15 }
  0xd6   : > { %v3654_v23 = vpop.f32.mrf.mxu2  ;;  %2741 = vmatmul.msk.bf16.gmra.mxu2 %vm762_vm4, %v3649_v54 }
  0xd9   : > { %v3663_v11 = vpop.f32.mrf.mxu0 }
  0xda   : > { %v3665_v21 = vpop.f32.mrf.mxu3 }
  0xdb   : > { %4392 = vst [vmem:[#allocation26_spill] sm:$0xff] %v3665_v21  ;;  %2762 = vmatmul.msk.bf16.gmra.mxu3 %vm762_vm4, %v3659_v60  ;;  %v3681_v21 = vpack.c.b16 %v1272_v46, %v1271_v56 }
  0xdd   : > { %4393 = vst [vmem:[#allocation27_spill] sm:$0xff] %v3681_v21 }
  0xde   : > { %v3673_v26 = vpop.f32.mrf.mxu1  ;;  %v3675_v1 = vpop.f32.mrf.mxu2 }
  0xe0   : > { %2779 = vmatmul.msk.bf16.gmra.mxu0 %vm762_vm4, %v3434_v42  ;;  %v2951_v42 = vld [vmem:[%s3145_s24 + $0x60] sm:$0xf] }
  0xe1   : > { %2709 = vmatmul.msk.bf16.gmra.mxu1 %vm762_vm4, %v3659_v60  ;;  %v3683_v24 = vpop.f32.mrf.mxu0  ;;  %v2726_v2 = vrot.slane %v2951_v42, 9  ;;  %v1203_v60 = vrot.slane %v1201_v5, 4 }
  0xe2   : > { %v3686_v7 = vpop.f32.mrf.mxu3 }
  0xe3   : > { %4394 = vst [vmem:[#allocation28_spill] sm:$0xff] %v3686_v7  ;;  %v1202_v19 = vsel %vm3475_vm7, %v2726_v2, %v1201_v5  ;;  %v1205_v46 = vsel %vm3475_vm7, %v1203_v60, %v1204_v13  ;;  %v1208_v60 = vrot.slane %v3231_v47, 5 }
  0xe4   : > { %v1273_v17 = vunpack.c.l.b16 %v1202_v19  ;;  %v1274_v42 = vunpack.c.l.b16 %v1205_v46  ;;  %v3727_v19 = vld [vmem:[%s3145_s24 + $0x6c] sm:$0xff] }
  0xe6   : > { %2742 = vmatmul.msk.bf16.gmra.mxu2 %vm762_vm4, %v3681_v21  ;;  %v3690_v0 = vpop.f32.mrf.mxu1  ;;  %v3716_v2 = vpack.c.b16 %v1274_v42, %v1273_v17  ;;  %v1210_v17 = vrot.slane %v1208_v60, 4 }
  0xe8   : > { %4397 = vst [vmem:[#allocation31_spill] sm:$0xff] %v3716_v2 }
  0xe9   : > { %v3697_v56 = vpop.f32.mrf.mxu2 }
  0xeb   : > { %2763 = vmatmul.msk.bf16.gmra.mxu3 %vm762_vm4, %v3694_v15 }
  0xed   : > { %v3705_v7 = vpop.f32.mrf.mxu0 }
  0xee   : > { %v3707_v32 = vpop.f32.mrf.mxu3  ;;  %v1044_v21 = vpop.f32.mrf.mxu1 }
  0xef   : > { %4396 = vst [vmem:[#allocation30_spill] sm:$0xff] %v3707_v32  ;;  %v1045_v54 = vadd.f32 %v1044_v21, %v3581_v10  ;;  %v1211_v21 = vrot.slane %v3238_v51, 5  ;;  %v2727_v32 = vrot.slane %v3224_v38, 9 }
  0xf0   : > { %2780 = vmatmul.msk.bf16.gmra.mxu0 %vm762_vm4, %v3203_v18 }
  0xf1   : > { %v3712_v44 = vpop.f32.mrf.mxu2  ;;  %2710 = vmatmul.msk.bf16.gmra.mxu1 %vm762_vm4, %v3694_v15  ;;  %v1209_v47 = vsel %vm3475_vm7, %v2727_v32, %v1208_v60 }
  0xf2   : > { %v1275_v61 = vunpack.c.l.b16 %v1209_v47 }
  0xf5   : > { %v3719_v5 = vpop.f32.mrf.mxu0 }
  0xf6   : > { %v3721_v13 = vpop.f32.mrf.mxu3  ;;  %2743 = vmatmul.msk.bf16.gmra.mxu2 %vm762_vm4, %v3716_v2  ;;  %v1046_v10 = vpop.f32.mrf.mxu1 }
  0xf7   : > { %4398 = vst [vmem:[#allocation32_spill] sm:$0xff] %v3721_v13  ;;  %v1047_v46 = vadd.f32 %v1046_v10, %v3605_v31  ;;  %v1212_v13 = vsel %vm3475_vm7, %v1210_v17, %v1211_v21  ;;  %v1215_v21 = vrot.slane %v3303_v34, 5 }
  0xf8   : > { %v1276_v35 = vunpack.c.l.b16 %v1212_v13  ;;  %v1218_v13 = vrot.slane %v3310_v50, 5 }
  0xf9   : > { %v1365_v42 = vpop.f32.mrf.mxu2 }
  0xfa   : > { %v1445_v18 = vadd.f32 %v1365_v42, %v1045_v54  ;;  %v3744_v10 = vpack.c.b16 %v1276_v35, %v1275_v61  ;;  %v3751_v42 = vld [vmem:[%s3145_s24 + $0x78] sm:$0xff] }
  0xfb   : > { %2764 = vmatmul.msk.bf16.gmra.mxu3 %vm762_vm4, %v3727_v19 }
  0xfd   : > { %v1655_v2 = vpop.f32.mrf.mxu0 }
  0xfe   : > { %v1499_v51 = vpop.f32.mrf.mxu3  ;;  %v1049_v15 = vpop.f32.mrf.mxu1 }
  0xff   : > { %v1579_v31 = vadd.f32 %v1499_v51, %v1445_v18  ;;  %v1050_v38 = vadd.f32 %v1049_v15, %v3620_v39 }
 0x100   : > { %2781 = vmatmul.msk.bf16.gmra.mxu0 %vm762_vm4, %v3283_v4 }
 0x101   : > { %v1367_v54 = vpop.f32.mrf.mxu2  ;;  %2711 = vmatmul.msk.bf16.gmra.mxu1 %vm762_vm4, %v3727_v19  ;;  %v3742_v32 = vadd.f32 %v1655_v2, %v1579_v31  ;;  %v2728_v2 = vrot.slane %v3299_v28, 9 }
 0x102   : > { %v1446_v60 = vadd.f32 %v1367_v54, %v1047_v46  ;;  %v1217_v46 = vrot.slane %v1215_v21, 4 }
 0x103   : > { %v1216_v50 = vsel %vm3475_vm7, %v2728_v2, %v1215_v21 }
 0x104   : > { %v1219_v51 = vsel %vm3475_vm7, %v1217_v46, %v1218_v13  ;;  %v1225_v46 = vrot.slane %v3398_v49, 5 }
 0x105   : > { %v1657_v17 = vpop.f32.mrf.mxu0 }
 0x106   : > { %v1501_v18 = vpop.f32.mrf.mxu3  ;;  %2744 = vmatmul.msk.bf16.gmra.mxu2 %vm762_vm4, %v3744_v10  ;;  %v1051_v39 = vpop.f32.mrf.mxu1 }
 0x107   : > { %v1580_v15 = vadd.f32 %v1501_v18, %v1446_v60  ;;  %v1052_v47 = vadd.f32 %v1051_v39, %v3641_v58  ;;  %v1277_v58 = vunpack.c.l.b16 %v1216_v50  ;;  %v1278_v18 = vunpack.c.l.b16 %v1219_v51  ;;  %v3777_v50 = vld [vmem:[%s3145_s24 + $0x84] sm:$0xff] }
 0x109   : > { %v1370_v61 = vpop.f32.mrf.mxu2  ;;  %v3755_v35 = vadd.f32 %v1657_v17, %v1580_v15  ;;  %v3770_v13 = vpack.c.b16 %v1278_v18, %v1277_v58  ;;  %v1222_v15 = vrot.slane %v3393_v30, 5 }
 0x10a   : > { %v1447_v34 = vadd.f32 %v1370_v61, %v1050_v38 }
 0x10b   : > { %2765 = vmatmul.msk.bf16.gmra.mxu3 %vm762_vm4, %v3751_v42 }
 0x10d   : > { %v1660_v31 = vpop.f32.mrf.mxu0 }
 0x10e   : > { %v1504_v54 = vpop.f32.mrf.mxu3  ;;  %v1054_v60 = vpop.f32.mrf.mxu1 }
 0x10f   : > { %v1581_v28 = vadd.f32 %v1504_v54, %v1447_v34  ;;  %v1055_v17 = vadd.f32 %v1054_v60, %v3663_v11 }
 0x110   : > { %2782 = vmatmul.msk.bf16.gmra.mxu0 %vm762_vm4, %v3368_v25 }
 0x111   : > { %v1372_v38 = vpop.f32.mrf.mxu2  ;;  %2712 = vmatmul.msk.bf16.gmra.mxu1 %vm762_vm4, %v3751_v42  ;;  %v3768_v21 = vadd.f32 %v1660_v31, %v1581_v28  ;;  %v4399_v31 = vld [vmem:[#allocation12_spill] sm:$0xff] }
 0x112   : > { %v1448_v39 = vadd.f32 %v1372_v38, %v1052_v47  ;;  %v2729_v54 = vrot.slane %v4399_v31, 9  ;;  %v1224_v47 = vrot.slane %v1222_v15, 4 }
 0x114   : > { %v1223_v49 = vsel %vm3475_vm7, %v2729_v54, %v1222_v15  ;;  %v1226_v18 = vsel %vm3475_vm7, %v1224_v47, %v1225_v46  ;;  %v2952_v54 = vld [vmem:[%s3145_s24 + $0x94] sm:$0xf] }
 0x115   : > { %v1662_v2 = vpop.f32.mrf.mxu0  ;;  %v1229_v47 = vrot.slane %v2952_v54, 5 }
 0x116   : > { %v1506_v61 = vpop.f32.mrf.mxu3  ;;  %2745 = vmatmul.msk.bf16.gmra.mxu2 %vm762_vm4, %v3770_v13  ;;  %v1056_v11 = vpop.f32.mrf.mxu1 }
 0x117   : > { %v1582_v34 = vadd.f32 %v1506_v61, %v1448_v39  ;;  %v1057_v51 = vadd.f32 %v1056_v11, %v3683_v24  ;;  %v1279_v39 = vunpack.c.l.b16 %v1223_v49  ;;  %v1280_v61 = vunpack.c.l.b16 %v1226_v18 }
 0x119   : > { %v1375_v60 = vpop.f32.mrf.mxu2  ;;  %v3781_v58 = vadd.f32 %v1662_v2, %v1582_v34  ;;  %v3796_v31 = vpack.c.b16 %v1280_v61, %v1279_v39 }
 0x11a   : > { %v1449_v30 = vadd.f32 %v1375_v60, %v1055_v17  ;;  %v4401_v17 = vld [vmem:[#allocation18_spill] sm:$0xff] }
 0x11b   : > { %4400 = vst [vmem:[#allocation12_spill] sm:$0xff] %v3781_v58  ;;  %2766 = vmatmul.msk.bf16.gmra.mxu3 %vm762_vm4, %v3777_v50 }
 0x11c   : > { %4403 = vst [vmem:[#allocation34_spill] sm:$0xff] %v3796_v31 }
 0x11d   : > { %v1665_v28 = vpop.f32.mrf.mxu0 }
 0x11e   : > { %v1509_v24 = vpop.f32.mrf.mxu3  ;;  %v1059_v38 = vpop.f32.mrf.mxu1 }
 0x11f   : > { %v1583_v11 = vadd.f32 %v1509_v24, %v1449_v30  ;;  %v1060_v2 = vadd.f32 %v1059_v38, %v3705_v7  ;;  %v2953_v30 = vld [vmem:[%s3145_s24 + $0x98] sm:$0x1]  ;;  %v3803_v38 = vld [vmem:[%s3145_s24 + $0x90] sm:$0xff] }
 0x120   : > { %2783 = vmatmul.msk.bf16.gmra.mxu0 %vm762_vm4, %v4401_v17  ;;  %v1232_v49 = vrot.slane %v2953_v30, 5  ;;  %4404 = vst [vmem:[#allocation35_spill] sm:$0xff] %v3803_v38 }
 0x121   : > { %v1377_v34 = vpop.f32.mrf.mxu2  ;;  %2713 = vmatmul.msk.bf16.gmra.mxu1 %vm762_vm4, %v3777_v50  ;;  %v3794_v15 = vadd.f32 %v1665_v28, %v1583_v11  ;;  %v2954_v28 = vld [vmem:[%s3145_s24 + $0x90] sm:$0xf] }
 0x122   : > { %v1450_v46 = vadd.f32 %v1377_v34, %v1057_v51  ;;  %v2730_v11 = vrot.slane %v2954_v28, 9  ;;  %v1231_v51 = vrot.slane %v1229_v47, 4 }
 0x123   : > { %4402 = vst [vmem:[#allocation33_spill] sm:$0xff] %v3794_v15 }
 0x124   : > { %v1230_v54 = vsel %vm3475_vm7, %v2730_v11, %v1229_v47  ;;  %v2955_v11 = vld [vmem:[%s3145_s24 + $0xa0] sm:$0xf] }
 0x125   : > { %v1667_v60 = vpop.f32.mrf.mxu0 }
 0x126   : > { %v1511_v7 = vpop.f32.mrf.mxu3  ;;  %2746 = vmatmul.msk.bf16.gmra.mxu2 %vm762_vm4, %v3796_v31  ;;  %v1061_v18 = vpop.f32.mrf.mxu1  ;;  %v2957_v31 = vld [vmem:[%s3145_s24 + $0x9c] sm:$0xf] }
 0x127   : > { %v1584_v24 = vadd.f32 %v1511_v7, %v1450_v46  ;;  %v1062_v58 = vadd.f32 %v1061_v18, %v3719_v5  ;;  %v1233_v46 = vsel %vm3475_vm7, %v1231_v51, %v1232_v49  ;;  %v1281_v18 = vunpack.c.l.b16 %v1230_v54 }
 0x128   : > { %v1282_v28 = vunpack.c.l.b16 %v1233_v46  ;;  %v1236_v51 = vrot.slane %v2955_v11, 5  ;;  %v2956_v46 = vld [vmem:[%s3145_s24 + $0xa4] sm:$0x1] }
 0x129   : > { %v1380_v39 = vpop.f32.mrf.mxu2  ;;  %v3807_v61 = vadd.f32 %v1667_v60, %v1584_v24  ;;  %v4406_v60 = vld [vmem:[#allocation6_spill] sm:$0xff] }
 0x12a   : > { %v1451_v34 = vadd.f32 %v1380_v39, %v1060_v2  ;;  %v3821_v49 = vpack.c.b16 %v1282_v28, %v1281_v18 }
 0x12b   : > { %4405 = vst [vmem:[#allocation36_spill] sm:$0xff] %v3807_v61  ;;  %2767 = vmatmul.msk.bf16.gmra.mxu3 %vm762_vm4, %v3803_v38 }
 0x12c   : > { %4408 = vst [vmem:[#allocation38_spill] sm:$0xff] %v3821_v49 }
 0x12d   : > { %v1670_v30 = vpop.f32.mrf.mxu0 }
 0x12e   : > { %v1514_v7 = vpop.f32.mrf.mxu3  ;;  %v1064_v5 = vpop.f32.mrf.mxu1 }
 0x12f   : > { %v1585_v15 = vadd.f32 %v1514_v7, %v1451_v34  ;;  %v1239_v7 = vrot.slane %v2956_v46, 5 }
 0x130   : > { %2784 = vmatmul.msk.bf16.gmra.mxu0 %vm762_vm4, %v4406_v60  ;;  %v3828_v60 = vld [vmem:[%s3145_s24 + $0x9c] sm:$0xff] }
 0x131   : > { %v1382_v2 = vpop.f32.mrf.mxu2  ;;  %2714 = vmatmul.msk.bf16.gmra.mxu1 %vm762_vm4, %v3803_v38  ;;  %v3819_v47 = vadd.f32 %v1670_v30, %v1585_v15  ;;  %4409 = vst [vmem:[#allocation39_spill] sm:$0xff] %v3828_v60  ;;  %v2731_v38 = vrot.slane %v2957_v31, 9  ;;  %v1238_v15 = vrot.slane %v1236_v51, 4 }
 0x132   : > { %v1452_v24 = vadd.f32 %v1382_v2, %v1062_v58  ;;  %v1065_v58 = vadd.f32 %v1064_v5, %v3558_v22  ;;  %v4411_v5 = vld [vmem:[#allocation7_spill] sm:$0xff] }
 0x133   : > { %4407 = vst [vmem:[#allocation37_spill] sm:$0xff] %v3819_v47  ;;  %v1237_v2 = vsel %vm3475_vm7, %v2731_v38, %v1236_v51 }
 0x134   : > { %v1283_v31 = vunpack.c.l.b16 %v1237_v2 }
 0x135   : > { %v1672_v39 = vpop.f32.mrf.mxu0 }
 0x136   : > { %v1516_v54 = vpop.f32.mrf.mxu3  ;;  %2747 = vmatmul.msk.bf16.gmra.mxu2 %vm762_vm4, %v3821_v49  ;;  %v1066_v34 = vpop.f32.mrf.mxu1 }
 0x137   : > { %v1586_v61 = vadd.f32 %v1516_v54, %v1452_v24  ;;  %v1240_v24 = vsel %vm3475_vm7, %v1238_v15, %v1239_v7  ;;  %v4414_v15 = vld [vmem:[#allocation9_spill] sm:$0xff] }
 0x138   : > { %v1284_v47 = vunpack.c.l.b16 %v1240_v24  ;;  %v4415_v24 = vld [vmem:[#allocation10_spill] sm:$0xff] }
 0x139   : > { %v1385_v30 = vpop.f32.mrf.mxu2  ;;  %v3832_v18 = vadd.f32 %v1672_v39, %v1586_v61  ;;  %v1067_v61 = vadd.f32 %v1066_v34, %v3573_v43  ;;  %v3854_v34 = vld [vmem:[%s3145_s24 + $0xa8] sm:$0xff] }
 0x13a   : > { %v1453_v28 = vadd.f32 %v1385_v30, %v1065_v58  ;;  %v3847_v7 = vpack.c.b16 %v1284_v47, %v1283_v31  ;;  %v1243_v58 = vrot.slane %v4414_v15, 5  ;;  %4416 = vst [vmem:[#allocation9_spill] sm:$0xff] %v3854_v34 }
 0x13b   : > { %4410 = vst [vmem:[#allocation40_spill] sm:$0xff] %v3832_v18  ;;  %2768 = vmatmul.msk.bf16.gmra.mxu3 %vm762_vm4, %v3828_v60  ;;  %v4417_v18 = vld [vmem:[#allocation8_spill] sm:$0xff] }
 0x13c   : > { %4413 = vst [vmem:[#allocation42_spill] sm:$0xff] %v3847_v7 }
 0x13d   : > { %v1675_v11 = vpop.f32.mrf.mxu0 }
 0x13e   : > { %v1519_v54 = vpop.f32.mrf.mxu3  ;;  %v1069_v46 = vpop.f32.mrf.mxu1 }
 0x13f   : > { %v1587_v22 = vadd.f32 %v1519_v54, %v1453_v28  ;;  %v1246_v54 = vrot.slane %v4415_v24, 5 }
 0x140   : > { %2785 = vmatmul.msk.bf16.gmra.mxu0 %vm762_vm4, %v4411_v5  ;;  %v2732_v5 = vrot.slane %v4417_v18, 9 }
 0x141   : > { %v1387_v39 = vpop.f32.mrf.mxu2  ;;  %2715 = vmatmul.msk.bf16.gmra.mxu1 %vm762_vm4, %v3828_v60  ;;  %v3845_v38 = vadd.f32 %v1675_v11, %v1587_v22  ;;  %v1245_v11 = vrot.slane %v1243_v58, 4  ;;  %v1070_v22 = vadd.f32 %v1069_v46, %v3593_v9 }
 0x142   : > { %v1454_v51 = vadd.f32 %v1387_v39, %v1067_v61  ;;  %v1244_v39 = vsel %vm3475_vm7, %v2732_v5, %v1243_v58  ;;  %v3872_v5 = vld [vmem:[%s3145_s24 + $0xc0] sm:$0xf] }
 0x143   : > { %4412 = vst [vmem:[#allocation41_spill] sm:$0xff] %v3845_v38  ;;  %v1285_v24 = vunpack.c.l.b16 %v1244_v39  ;;  %v4419_v38 = vld [vmem:[#allocation13_spill] sm:$0xff]  ;;  %v1612_v39 = vshrl.u32 %v3872_v5, 16 }
 0x144   : > { %4420 = vst [vmem:[#allocation8_spill] sm:$0xff] %v3872_v5 }
 0x145   : > { %v1677_v30 = vpop.f32.mrf.mxu0 }
 0x146   : > { %v1521_v2 = vpop.f32.mrf.mxu3  ;;  %2748 = vmatmul.msk.bf16.gmra.mxu2 %vm762_vm4, %v3847_v7  ;;  %v1071_v28 = vpop.f32.mrf.mxu1 }
 0x147   : > { %v1588_v43 = vadd.f32 %v1521_v2, %v1454_v51  ;;  %v1247_v51 = vsel %vm3475_vm7, %v1245_v11, %v1246_v54 }
 0x148   : > { %v1286_v9 = vunpack.c.l.b16 %v1247_v51 }
 0x149   : > { %v1390_v47 = vpop.f32.mrf.mxu2  ;;  %v3858_v31 = vadd.f32 %v1677_v30, %v1588_v43  ;;  %v1072_v30 = vadd.f32 %v1071_v28, %v3611_v29  ;;  %v1615_v29 = vshll.u32 %v3872_v5, 16 }
 0x14a   : > { %v1455_v61 = vadd.f32 %v1390_v47, %v1070_v22  ;;  %v3876_v11 = vpack.c.b16 %v1286_v9, %v1285_v24  ;;  %v3879_v22 = vld [vmem:[%s3145_s24 + $0xc4] sm:$0xf]  ;;  %v4424_v47 = vld [vmem:[#allocation15_spill] sm:$0xff]  ;;  %v4425_v24 = vld [vmem:[#allocation16_spill] sm:$0xff] }
 0x14b   : > { %4418 = vst [vmem:[#allocation10_spill] sm:$0xff] %v3858_v31  ;;  %2769 = vmatmul.msk.bf16.gmra.mxu3 %vm762_vm4, %v3854_v34  ;;  %v1621_v28 = vshll.u32 %v3879_v22, 16  ;;  %v1253_v9 = vrot.slane %v4425_v24, 5  ;;  %v1617_v7 = vrot.slane %v1615_v29, 5 }
 0x14c   : > { %4422 = vst [vmem:[#allocation44_spill] sm:$0xff] %v3876_v11 }
 0x14d   : > { %v1680_v15 = vpop.f32.mrf.mxu0  ;;  %4423 = vst [vmem:[#allocation45_spill] sm:$0xff] %v3879_v22 }
 0x14e   : > { %v1524_v18 = vpop.f32.mrf.mxu3  ;;  %v1074_v2 = vpop.f32.mrf.mxu1 }
 0x14f   : > { %v1589_v46 = vadd.f32 %v1524_v18, %v1455_v61  ;;  %v1250_v61 = vrot.slane %v4424_v47, 5  ;;  %v1625_v18 = vshrl.u32 %v3879_v22, 16  ;;  %v1075_v5 = vadd.f32 %v1074_v2, %v3631_v48 }
 0x150   : > { %2786 = vmatmul.msk.bf16.gmra.mxu0 %vm762_vm4, %v4419_v38  ;;  %v1614_v38 = vrot.slane %v1612_v39, 4  ;;  %v1623_v22 = vrot.slane %v1621_v28, 5 }
 0x151   : > { %v1392_v43 = vpop.f32.mrf.mxu2  ;;  %2716 = vmatmul.msk.bf16.gmra.mxu1 %vm762_vm4, %v3854_v34  ;;  %v3874_v58 = vadd.f32 %v1680_v15, %v1589_v46  ;;  %v1627_v60 = vrot.slane %v1625_v18, 4 }
 0x152   : > { %v1456_v54 = vadd.f32 %v1392_v43, %v1072_v30  ;;  %v3890_v30 = vld [vmem:[%s3145_s24 + $0xb4] sm:$0xff]  ;;  %v4426_v43 = vld [vmem:[#allocation14_spill] sm:$0xff]  ;;  %v1618_v2 = vor.u32 %v1617_v7, %v1614_v38 }
 0x153   : > { %4421 = vst [vmem:[#allocation43_spill] sm:$0xff] %v3874_v58  ;;  %v2733_v47 = vrot.slane %v4426_v43, 9  ;;  %v1252_v58 = vrot.slane %v1250_v61, 4  ;;  %v1628_v39 = vor.u32 %v1627_v60, %v1623_v22 }
 0x155   : > { %v1682_v51 = vpop.f32.mrf.mxu0  ;;  %v1629_v38 = vrot.slane %v1628_v39, 4 }
 0x156   : > { %v1526_v31 = vpop.f32.mrf.mxu3  ;;  %2749 = vmatmul.msk.bf16.gmra.mxu2 %vm762_vm4, %v3876_v11  ;;  %v1076_v15 = vpop.f32.mrf.mxu1  ;;  %v3897_v11 = vld [vmem:[%s3145_s24 + $0xc8] sm:$0x1] }
 0x157   : > { %v1590_v46 = vadd.f32 %v1526_v31, %v1456_v54  ;;  %v1251_v31 = vsel %vm3475_vm7, %v2733_v47, %v1250_v61  ;;  %v1254_v54 = vsel %vm3475_vm7, %v1252_v58, %v1253_v9  ;;  %v1631_v29 = vshll.u32 %v3897_v11, 16 }
 0x158   : > { %v1287_v18 = vunpack.c.l.b16 %v1251_v31  ;;  %v1077_v24 = vadd.f32 %v1076_v15, %v3652_v63  ;;  %v1619_v58 = vrot.slane %v1618_v2, 4 }
 0x159   : > { %v1395_v34 = vpop.f32.mrf.mxu2  ;;  %v3894_v49 = vadd.f32 %v1682_v51, %v1590_v46  ;;  %v1633_v60 = vrot.slane %v1631_v29, 5 }
 0x15a   : > { %v1457_v17 = vadd.f32 %v1395_v34, %v1075_v5  ;;  %v1288_v34 = vunpack.c.l.b16 %v1254_v54  ;;  %v3922_v54 = vld [vmem:[%s3145_s24 + $0xc0] sm:$0xff] }
 0x15b   : > { %2770 = vmatmul.msk.bf16.gmra.mxu3 %vm762_vm4, %v3890_v30  ;;  %v1634_v63 = vsel %vm3172_vm3, %v1629_v38, %v1633_v60 }
 0x15c   : > { %v3913_v46 = vpack.c.b16 %v1288_v34, %v1287_v18  ;;  %v1638_v39 = vunpack.c.l.b16 %v1634_v63 }
 0x15d   : > { %v1685_v48 = vpop.f32.mrf.mxu0 }
 0x15e   : > { %v1529_v28 = vpop.f32.mrf.mxu3  ;;  %v1079_v51 = vpop.f32.mrf.mxu1 }
 0x15f   : > { %v1591_v5 = vadd.f32 %v1529_v28, %v1457_v17  ;;  %v1624_v17 = vsel %vm3172_vm3, %v1619_v58, %v1623_v22 }
 0x160   : > { %2787 = vmatmul.msk.bf16.gmra.mxu0 %vm762_vm4, %v3484_v53  ;;  %v1637_v2 = vunpack.c.l.b16 %v1624_v17 }
 0x161   : > { %v1397_v61 = vpop.f32.mrf.mxu2  ;;  %2717 = vmatmul.msk.bf16.gmra.mxu1 %vm762_vm4, %v3890_v30  ;;  %v3911_v7 = vadd.f32 %v1685_v48, %v1591_v5  ;;  %v1080_v48 = vadd.f32 %v1079_v51, %v3673_v26 }
 0x162   : > { %v1458_v9 = vadd.f32 %v1397_v61, %v1077_v24  ;;  %v3929_v22 = vpack.c.b16 %v1638_v39, %v1637_v2 }
 0x165   : > { %v1687_v43 = vpop.f32.mrf.mxu0 }
 0x166   : > { %v1531_v15 = vpop.f32.mrf.mxu3  ;;  %2750 = vmatmul.msk.bf16.gmra.mxu2 %vm762_vm4, %v3913_v46  ;;  %v1081_v47 = vpop.f32.mrf.mxu1 }
 0x167   : > { %v1592_v31 = vadd.f32 %v1531_v15, %v1458_v9  ;;  %v1082_v26 = vadd.f32 %v1081_v47, %v3690_v0 }
 0x169   : > { %v1400_v29 = vpop.f32.mrf.mxu2  ;;  %v3925_v28 = vadd.f32 %v1687_v43, %v1592_v31 }
 0x16a   : > { %v1459_v18 = vadd.f32 %v1400_v29, %v1080_v48 }
 0x16b   : > { %2771 = vmatmul.msk.bf16.gmra.mxu3 %vm762_vm4, %v3922_v54 }
 0x16d   : > { %v1690_v34 = vpop.f32.mrf.mxu0 }
 0x16e   : > { %v1534_v5 = vpop.f32.mrf.mxu3  ;;  %v1084_v24 = vpop.f32.mrf.mxu1 }
 0x16f   : > { %v1593_v61 = vadd.f32 %v1534_v5, %v1459_v18  ;;  %v1085_v63 = vadd.f32 %v1084_v24, %v3575_v16 }
 0x170   : > { %2788 = vmatmul.msk.bf16.gmra.mxu0 %vm762_vm4, %v3929_v22 }
 0x171   : > { %v1402_v51 = vpop.f32.mrf.mxu2  ;;  %2791 = vmatmul.msk.bf16.vlgmr.msra.gmra.mxu1 %vm762_vm4, %v3509_v55  ;;  %v3936_v58 = vadd.f32 %v1690_v34, %v1593_v61 }
 0x172   : > { %v1460_v38 = vadd.f32 %v1402_v51, %v1082_v26 }
 0x175   : > { %v1692_v60 = vpop.f32.mrf.mxu0 }
 0x176   : > { %v1536_v9 = vpop.f32.mrf.mxu3  ;;  %2812 = vmatmul.msk.bf16.vlgmr.msra.gmra.mxu2 %vm762_vm4, %v3521_v6  ;;  %v1086_v43 = vpop.f32.mrf.mxu1 }
 0x177   : > { %v1594_v17 = vadd.f32 %v1536_v9, %v1460_v38  ;;  %v1087_v6 = vadd.f32 %v1086_v43, %v3597_v57 }
 0x179   : > { %v1405_v15 = vpop.f32.mrf.mxu2  ;;  %v3941_v31 = vadd.f32 %v1692_v60, %v1594_v17 }
 0x17a   : > { %v1461_v0 = vadd.f32 %v1405_v15, %v1085_v63 }
 0x17b   : > { %2829 = vmatmul.msk.bf16.vlgmr.msra.gmra.mxu3 %vm762_vm4, %v3412_v45 }
 0x17d   : > { %v1695_v55 = vpop.f32.mrf.mxu0 }
 0x17e   : > { %v1539_v47 = vpop.f32.mrf.mxu3  ;;  %v1089_v48 = vpop.f32.mrf.mxu1 }
 0x17f   : > { %v1595_v2 = vadd.f32 %v1539_v47, %v1461_v0  ;;  %v1090_v24 = vadd.f32 %v1089_v48, %v3617_v59 }
 0x180   : > { %2847 = vmatmul.msk.bf16.vlgmr.msra.gmra.mxu0 %vm762_vm4, %v3535_v52 }
 0x181   : > { %v1407_v39 = vpop.f32.mrf.mxu2  ;;  %2792 = vmatmul.msk.bf16.gmra.mxu1 %vm762_vm4, %v3535_v52  ;;  %v3950_v16 = vadd.f32 %v1695_v55, %v1595_v2 }
 0x182   : > { %v1462_v29 = vadd.f32 %v1407_v39, %v1087_v6 }
 0x185   : > { %v1697_v18 = vpop.f32.mrf.mxu0 }
 0x186   : > { %v1541_v34 = vpop.f32.mrf.mxu3  ;;  %2813 = vmatmul.msk.bf16.gmra.mxu2 %vm762_vm4, %v3541_v41  ;;  %v1091_v45 = vpop.f32.mrf.mxu1 }
 0x187   : > { %v1596_v5 = vadd.f32 %v1541_v34, %v1462_v29  ;;  %v1092_v41 = vadd.f32 %v1091_v45, %v3635_v3 }
 0x189   : > { %v1410_v61 = vpop.f32.mrf.mxu2  ;;  %v3955_v26 = vadd.f32 %v1697_v18, %v1596_v5 }
 0x18a   : > { %v1463_v57 = vadd.f32 %v1410_v61, %v1090_v24 }
 0x18b   : > { %2830 = vmatmul.msk.bf16.gmra.mxu3 %vm762_vm4, %v3502_v20 }
 0x18d   : > { %v1700_v52 = vpop.f32.mrf.mxu0 }
 0x18e   : > { %v1544_v51 = vpop.f32.mrf.mxu3  ;;  %v1094_v38 = vpop.f32.mrf.mxu1 }
 0x18f   : > { %v1597_v60 = vadd.f32 %v1544_v51, %v1463_v57  ;;  %v1095_v0 = vadd.f32 %v1094_v38, %v3654_v23 }
 0x190   : > { %2848 = vmatmul.msk.bf16.gmra.mxu0 %vm762_vm4, %v3555_v40 }
 0x191   : > { %v1412_v9 = vpop.f32.mrf.mxu2  ;;  %2793 = vmatmul.msk.bf16.gmra.mxu1 %vm762_vm4, %v3555_v40  ;;  %v3964_v59 = vadd.f32 %v1700_v52, %v1597_v60 }
 0x192   : > { %v1464_v43 = vadd.f32 %v1412_v9, %v1092_v41 }
 0x195   : > { %v1702_v17 = vpop.f32.mrf.mxu0 }
 0x196   : > { %v1546_v63 = vpop.f32.mrf.mxu3  ;;  %2814 = vmatmul.msk.bf16.gmra.mxu2 %vm762_vm4, %v3563_v8  ;;  %v1096_v20 = vpop.f32.mrf.mxu1 }
 0x197   : > { %v1598_v15 = vadd.f32 %v1546_v63, %v1464_v43  ;;  %v1097_v8 = vadd.f32 %v1096_v20, %v3675_v1  ;;  %v4427_v43 = vld [vmem:[#allocation21_spill] sm:$0xff]  ;;  %v4428_v63 = vld [vmem:[#allocation19_spill] sm:$0xff] }
 0x199   : > { %v1415_v55 = vpop.f32.mrf.mxu2  ;;  %v3969_v47 = vadd.f32 %v1702_v17, %v1598_v15 }
 0x19a   : > { %v1465_v3 = vadd.f32 %v1415_v55, %v1095_v0  ;;  %v4429_v55 = vld [vmem:[#allocation11_spill] sm:$0xff] }
 0x19b   : > { %2831 = vmatmul.msk.bf16.gmra.mxu3 %vm762_vm4, %v3184_v62 }
 0x19d   : > { %v1705_v40 = vpop.f32.mrf.mxu0 }
 0x19e   : > { %v1549_v48 = vpop.f32.mrf.mxu3  ;;  %v1099_v2 = vpop.f32.mrf.mxu1 }
 0x19f   : > { %v1599_v6 = vadd.f32 %v1549_v48, %v1465_v3  ;;  %v1100_v5 = vadd.f32 %v1099_v2, %v3697_v56  ;;  %v4430_v2 = vld [vmem:[#allocation24_spill] sm:$0xff] }
 0x1a0   : > { %2849 = vmatmul.msk.bf16.gmra.mxu0 %vm762_vm4, %v3583_v12 }
 0x1a1   : > { %v1417_v39 = vpop.f32.mrf.mxu2  ;;  %2794 = vmatmul.msk.bf16.gmra.mxu1 %vm762_vm4, %v3583_v12  ;;  %v3978_v23 = vadd.f32 %v1705_v40, %v1599_v6  ;;  %v4431_v6 = vld [vmem:[#allocation20_spill] sm:$0xff] }
 0x1a2   : > { %v1466_v29 = vadd.f32 %v1417_v39, %v1097_v8 }
 0x1a5   : > { %v1707_v18 = vpop.f32.mrf.mxu0 }
 0x1a6   : > { %v1551_v34 = vpop.f32.mrf.mxu3  ;;  %2815 = vmatmul.msk.bf16.gmra.mxu2 %vm762_vm4, %v3591_v27  ;;  %v1101_v62 = vpop.f32.mrf.mxu1 }
 0x1a7   : > { %v1600_v45 = vadd.f32 %v1551_v34, %v1466_v29  ;;  %v1102_v27 = vadd.f32 %v1101_v62, %v3712_v44 }
 0x1a9   : > { %v1420_v24 = vpop.f32.mrf.mxu2  ;;  %v3983_v61 = vadd.f32 %v1707_v18, %v1600_v45  ;;  %v4432_v45 = vld [vmem:[#allocation25_spill] sm:$0xff] }
 0x1aa   : > { %v1467_v1 = vadd.f32 %v1420_v24, %v1100_v5 }
 0x1ab   : > { %2832 = vmatmul.msk.bf16.gmra.mxu3 %vm762_vm4, %v3258_v37 }
 0x1ad   : > { %v1710_v12 = vpop.f32.mrf.mxu0 }
 0x1ae   : > { %v1554_v57 = vpop.f32.mrf.mxu3  ;;  %v1104_v52 = vpop.f32.mrf.mxu1 }
 0x1af   : > { %v1601_v51 = vadd.f32 %v1554_v57, %v1467_v1  ;;  %v1105_v20 = vadd.f32 %v1104_v52, %v4428_v63  ;;  %v4433_v1 = vld [vmem:[#allocation22_spill] sm:$0xff] }
 0x1b0   : > { %2850 = vmatmul.msk.bf16.gmra.mxu0 %vm762_vm4, %v3615_v33 }
 0x1b1   : > { %v1422_v38 = vpop.f32.mrf.mxu2  ;;  %2795 = vmatmul.msk.bf16.gmra.mxu1 %vm762_vm4, %v3615_v33  ;;  %v3992_v56 = vadd.f32 %v1710_v12, %v1601_v51 }
 0x1b2   : > { %v1468_v60 = vadd.f32 %v1422_v38, %v1102_v27  ;;  %v4434_v27 = vld [vmem:[#allocation17_spill] sm:$0xff] }
 0x1b5   : > { %v1712_v41 = vpop.f32.mrf.mxu0 }
 0x1b6   : > { %v1556_v9 = vpop.f32.mrf.mxu3  ;;  %2816 = vmatmul.msk.bf16.gmra.mxu2 %vm762_vm4, %v4427_v43  ;;  %v1106_v37 = vpop.f32.mrf.mxu1  ;;  %v4435_v43 = vld [vmem:[#allocation27_spill] sm:$0xff] }
 0x1b7   : > { %v1602_v17 = vadd.f32 %v1556_v9, %v1468_v60  ;;  %v1107_v8 = vadd.f32 %v1106_v37, %v4431_v6  ;;  %v4436_v37 = vld [vmem:[#allocation23_spill] sm:$0xff] }
 0x1b9   : > { %v1425_v15 = vpop.f32.mrf.mxu2  ;;  %v3997_v0 = vadd.f32 %v1712_v41, %v1602_v17 }
 0x1ba   : > { %v1469_v44 = vadd.f32 %v1425_v15, %v1105_v20 }
 0x1bb   : > { %2833 = vmatmul.msk.bf16.gmra.mxu3 %vm762_vm4, %v4429_v55 }
 0x1bd   : > { %v1715_v33 = vpop.f32.mrf.mxu0 }
 0x1be   : > { %v1559_v3 = vpop.f32.mrf.mxu3  ;;  %v1109_v40 = vpop.f32.mrf.mxu1 }
 0x1bf   : > { %v1603_v48 = vadd.f32 %v1559_v3, %v1469_v44  ;;  %v1110_v12 = vadd.f32 %v1109_v40, %v4433_v1  ;;  %v4441_v1 = vld [vmem:[#allocation28_spill] sm:$0xff] }
 0x1c0   : > { %2851 = vmatmul.msk.bf16.gmra.mxu0 %vm762_vm4, %v4430_v2 }
 0x1c1   : > { %v1427_v39 = vpop.f32.mrf.mxu2  ;;  %2796 = vmatmul.msk.bf16.gmra.mxu1 %vm762_vm4, %v4430_v2  ;;  %v4006_v29 = vadd.f32 %v1715_v33, %v1603_v48  ;;  %v4437_v33 = vld [vmem:[#allocation29_spill] sm:$0xff]  ;;  %v4438_v48 = vld [vmem:[#allocation26_spill] sm:$0xff] }
 0x1c2   : > { %v1470_v18 = vadd.f32 %v1427_v39, %v1107_v8 }
 0x1c5   : > { %v1717_v34 = vpop.f32.mrf.mxu0 }
 0x1c6   : > { %v1561_v62 = vpop.f32.mrf.mxu3  ;;  %2817 = vmatmul.msk.bf16.gmra.mxu2 %vm762_vm4, %v4432_v45  ;;  %v1111_v5 = vpop.f32.mrf.mxu1 }
 0x1c7   : > { %v1604_v24 = vadd.f32 %v1561_v62, %v1470_v18  ;;  %v1112_v17 = vadd.f32 %v1111_v5, %v4436_v37  ;;  %v4439_v18 = vld [vmem:[#allocation5_spill] sm:$0xff] }
 0x1c9   : > { %v1430_v57 = vpop.f32.mrf.mxu2  ;;  %v4011_v52 = vadd.f32 %v1717_v34, %v1604_v24  ;;  %v4440_v24 = vld [vmem:[#allocation31_spill] sm:$0xff] }
 0x1ca   : > { %v1471_v51 = vadd.f32 %v1430_v57, %v1110_v12 }
 0x1cb   : > { %2834 = vmatmul.msk.bf16.gmra.mxu3 %vm762_vm4, %v4434_v27 }
 0x1cd   : > { %v1720_v38 = vpop.f32.mrf.mxu0 }
 0x1ce   : > { %v1564_v60 = vpop.f32.mrf.mxu3  ;;  %v1114_v41 = vpop.f32.mrf.mxu1 }
 0x1cf   : > { %v1605_v9 = vadd.f32 %v1564_v60, %v1471_v51  ;;  %v1115_v2 = vadd.f32 %v1114_v41, %v4438_v48 }
 0x1d0   : > { %2852 = vmatmul.msk.bf16.gmra.mxu0 %vm762_vm4, %v4435_v43 }
 0x1d1   : > { %v1432_v63 = vpop.f32.mrf.mxu2  ;;  %2797 = vmatmul.msk.bf16.gmra.mxu1 %vm762_vm4, %v4435_v43  ;;  %v4020_v20 = vadd.f32 %v1720_v38, %v1605_v9  ;;  %v4442_v43 = vld [vmem:[#allocation30_spill] sm:$0xff] }
 0x1d2   : > { %v1472_v15 = vadd.f32 %v1432_v63, %v1112_v17 }
 0x1d5   : > { %v1722_v44 = vpop.f32.mrf.mxu0 }
 0x1d6   : > { %v1566_v55 = vpop.f32.mrf.mxu3  ;;  %2818 = vmatmul.msk.bf16.gmra.mxu2 %vm762_vm4, %v4437_v33  ;;  %v1116_v3 = vpop.f32.mrf.mxu1 }
 0x1d7   : > { %v1606_v40 = vadd.f32 %v1566_v55, %v1472_v15  ;;  %v1117_v12 = vadd.f32 %v1116_v3, %v4441_v1 }
 0x1d9   : > { %v1435_v6 = vpop.f32.mrf.mxu2  ;;  %v4025_v8 = vadd.f32 %v1722_v44, %v1606_v40  ;;  %v4443_v40 = vld [vmem:[#allocation32_spill] sm:$0xff] }
 0x1da   : > { %v1473_v39 = vadd.f32 %v1435_v6, %v1115_v2 }
 0x1db   : > { %2835 = vmatmul.msk.bf16.gmra.mxu3 %vm762_vm4, %v4439_v18 }
 0x1dd   : > { %v1725_v34 = vpop.f32.mrf.mxu0 }
 0x1de   : > { %v1569_v62 = vpop.f32.mrf.mxu3  ;;  %v1119_v45 = vpop.f32.mrf.mxu1 }
 0x1df   : > { %v1607_v5 = vadd.f32 %v1569_v62, %v1473_v39  ;;  %v1120_v37 = vadd.f32 %v1119_v45, %v4442_v43 }
 0x1e0   : > { %2853 = vmatmul.msk.bf16.gmra.mxu0 %vm762_vm4, %v4440_v24 }
 0x1e1   : > { %v1437_v57 = vpop.f32.mrf.mxu2  ;;  %2798 = vmatmul.msk.bf16.gmra.mxu1 %vm762_vm4, %v4440_v24  ;;  %v4034_v51 = vadd.f32 %v1725_v34, %v1607_v5 }
 0x1e2   : > { %v1474_v27 = vadd.f32 %v1437_v57, %v1117_v12 }
 0x1e5   : > { %v1727_v38 = vpop.f32.mrf.mxu0 }
 0x1e6   : > { %v1571_v60 = vpop.f32.mrf.mxu3  ;;  %2819 = vmatmul.msk.bf16.gmra.mxu2 %vm762_vm4, %v3727_v19  ;;  %v1121_v41 = vpop.f32.mrf.mxu1 }
 0x1e7   : > { %v1608_v9 = vadd.f32 %v1571_v60, %v1474_v27  ;;  %v1122_v19 = vadd.f32 %v1121_v41, %v4443_v40  ;;  %v4068_v27 = vld [vmem:[%s4323_s3] ss:$0 sm:$0xff] }
 0x1e9   : > { %v1440_v17 = vpop.f32.mrf.mxu2  ;;  %v4039_v63 = vadd.f32 %v1727_v38, %v1608_v9 }
 0x1ea   : > { %v1475_v15 = vadd.f32 %v1440_v17, %v1120_v37 }
 0x1eb   : > { %2836 = vmatmul.msk.bf16.gmra.mxu3 %vm762_vm4, %v3283_v4 }
 0x1ed   : > { %v1730_v44 = vpop.f32.mrf.mxu0 }
 0x1ee   : > { %v1574_v55 = vpop.f32.mrf.mxu3  ;;  %v1795_v33 = vpop.f32.mrf.mxu1 }
 0x1ef   : > { %v1609_v3 = vadd.f32 %v1574_v55, %v1475_v15  ;;  %v1875_v62 = vadd.f32 %v1795_v33, %v3742_v32 }
 0x1f0   : > { %2854 = vmatmul.msk.bf16.gmra.mxu0 %vm762_vm4, %v3744_v10 }
 0x1f1   : > { %v1442_v48 = vpop.f32.mrf.mxu2  ;;  %2799 = vmatmul.msk.bf16.gmra.mxu1 %vm762_vm4, %v3744_v10  ;;  %v4048_v2 = vadd.f32 %v1730_v44, %v1609_v3  ;;  %v4444_v3 = vld [vmem:[#allocation18_spill] sm:$0xff] }
 0x1f2   : > { %v1476_v6 = vadd.f32 %v1442_v48, %v1122_v19 }
 0x1f5   : > { %v1732_v39 = vpop.f32.mrf.mxu0 }
 0x1f6   : > { %v1576_v18 = vpop.f32.mrf.mxu3  ;;  %2820 = vmatmul.msk.bf16.gmra.mxu2 %vm762_vm4, %v3751_v42  ;;  %v1797_v4 = vpop.f32.mrf.mxu1  ;;  %v4060_v42 = vld [vmem:[%s4322_s2] ss:$0 sm:$0xff] }
 0x1f7   : > { %v1610_v34 = vadd.f32 %v1576_v18, %v1476_v6 }
 0x1f9   : > { %v1929_v45 = vpop.f32.mrf.mxu2  ;;  %v4053_v5 = vadd.f32 %v1732_v39, %v1610_v34  ;;  %v4446_v34 = vld [vmem:[#allocation12_spill] sm:$0xff] }
 0x1fa   : > { %v2009_v10 = vadd.f32 %v1929_v45, %v1875_v62 }
 0x1fb   : > { %2837 = vmatmul.msk.bf16.gmra.mxu3 %vm762_vm4, %v3368_v25  ;;  %v1876_v25 = vadd.f32 %v1797_v4, %v3755_v35  ;;  %v4445_v4 = vld [vmem:[#allocation34_spill] sm:$0xff] }
 0x1fd   : > { %v2225_v24 = vpop.f32.mrf.mxu0 }
 0x1fe   : > { %v2085_v1 = vpop.f32.mrf.mxu3  ;;  %v1800_v12 = vpop.f32.mrf.mxu1 }
 0x1ff   : > { %v2165_v57 = vadd.f32 %v2085_v1, %v2009_v10 }
 0x200   : > { %2855 = vmatmul.msk.bf16.gmra.mxu0 %vm762_vm4, %v3770_v13 }
 0x201   : > { %v2305_v32 = vadd.f32 %v2225_v24, %v2165_v57  ;;  %v1931_v38 = vpop.f32.mrf.mxu2  ;;  %2800 = vmatmul.msk.bf16.gmra.mxu1 %vm762_vm4, %v3770_v13  ;;  %v1877_v13 = vadd.f32 %v1800_v12, %v3768_v21 }
 0x202   : > { %v2010_v41 = vadd.f32 %v1931_v38, %v1876_v25 }
 0x203   : > { %v2341_v60 = vmul.f32 %v4060_v42, %v2305_v32  ;;  %v4447_v32 = vld [vmem:[#allocation35_spill] sm:$0xff] }
 0x205   : > { %v2377_v9 = vadd.f32 %v4068_v27, %v2341_v60  ;;  %v2227_v43 = vpop.f32.mrf.mxu0 }
 0x206   : > { %v2087_v37 = vpop.f32.mrf.mxu3  ;;  %2821 = vmatmul.msk.bf16.gmra.mxu2 %vm762_vm4, %v3777_v50  ;;  %v1802_v17 = vpop.f32.mrf.mxu1 }
 0x207   : > { %v2409_v15 = vmax.f32 %v2377_v9, 0.0  ;;  %v2166_v44 = vadd.f32 %v2087_v37, %v2010_v41  ;;  %v1878_v62 = vadd.f32 %v1802_v17, %v4446_v34  ;;  %v4448_v9 = vld [vmem:[#allocation33_spill] sm:$0xff] }
 0x209   : > { %2441 = vst [vmem:[%s4079_s22] sm:$0xff] %v2409_v15  ;;  %v2306_v35 = vadd.f32 %v2227_v43, %v2166_v44  ;;  %v1934_v55 = vpop.f32.mrf.mxu2  ;;  %v4449_v15 = vld [vmem:[#allocation6_spill] sm:$0xff] }
 0x20a   : > { %v2011_v40 = vadd.f32 %v1934_v55, %v1877_v13 }
 0x20b   : > { %v2342_v33 = vmul.f32 %v4060_v42, %v2306_v35  ;;  %2838 = vmatmul.msk.bf16.gmra.mxu3 %vm762_vm4, %v4444_v3 }
 0x20d   : > { %v2378_v50 = vadd.f32 %v4068_v27, %v2342_v33  ;;  %v2230_v19 = vpop.f32.mrf.mxu0 }
 0x20e   : > { %v2090_v48 = vpop.f32.mrf.mxu3  ;;  %v1805_v6 = vpop.f32.mrf.mxu1 }
 0x20f   : > { %v2410_v39 = vmax.f32 %v2378_v50, 0.0  ;;  %v2167_v18 = vadd.f32 %v2090_v48, %v2011_v40  ;;  %v1879_v43 = vadd.f32 %v1805_v6, %v4448_v9  ;;  %v4450_v50 = vld [vmem:[#allocation38_spill] sm:$0xff]  ;;  %v4451_v48 = vld [vmem:[#allocation36_spill] sm:$0xff] }
 0x210   : > { %2856 = vmatmul.msk.bf16.gmra.mxu0 %vm762_vm4, %v4445_v4 }
 0x211   : > { %2442 = vst [vmem:[%s4079_s22 + $0x8] sm:$0xff] %v2410_v39  ;;  %v2307_v21 = vadd.f32 %v2230_v19, %v2167_v18  ;;  %v1936_v45 = vpop.f32.mrf.mxu2  ;;  %2801 = vmatmul.msk.bf16.gmra.mxu1 %vm762_vm4, %v4445_v4 }
 0x212   : > { %v2012_v24 = vadd.f32 %v1936_v45, %v1878_v62  ;;  %v4452_v45 = vld [vmem:[#allocation39_spill] sm:$0xff] }
 0x213   : > { %v2343_v10 = vmul.f32 %v4060_v42, %v2307_v21 }
 0x215   : > { %v2379_v1 = vadd.f32 %v4068_v27, %v2343_v10  ;;  %v2232_v12 = vpop.f32.mrf.mxu0 }
 0x216   : > { %v2092_v57 = vpop.f32.mrf.mxu3  ;;  %2822 = vmatmul.msk.bf16.gmra.mxu2 %vm762_vm4, %v4447_v32  ;;  %v1807_v25 = vpop.f32.mrf.mxu1 }
 0x217   : > { %v2411_v38 = vmax.f32 %v2379_v1, 0.0  ;;  %v2168_v60 = vadd.f32 %v2092_v57, %v2012_v24  ;;  %v1880_v6 = vadd.f32 %v1807_v25, %v4451_v48  ;;  %v4453_v57 = vld [vmem:[#allocation37_spill] sm:$0xff] }
 0x219   : > { %2443 = vst [vmem:[%s4079_s22 + $0x10] sm:$0xff] %v2411_v38  ;;  %v2308_v41 = vadd.f32 %v2232_v12, %v2168_v60  ;;  %v1939_v37 = vpop.f32.mrf.mxu2  ;;  %v4454_v60 = vld [vmem:[#allocation7_spill] sm:$0xff] }
 0x21a   : > { %v2013_v44 = vadd.f32 %v1939_v37, %v1879_v43 }
 0x21b   : > { %v2344_v17 = vmul.f32 %v4060_v42, %v2308_v41  ;;  %2839 = vmatmul.msk.bf16.gmra.mxu3 %vm762_vm4, %v4449_v15 }
 0x21d   : > { %v2380_v35 = vadd.f32 %v4068_v27, %v2344_v17  ;;  %v2235_v13 = vpop.f32.mrf.mxu0 }
 0x21e   : > { %v2095_v55 = vpop.f32.mrf.mxu3  ;;  %v1810_v33 = vpop.f32.mrf.mxu1 }
 0x21f   : > { %v2412_v3 = vmax.f32 %v2380_v35, 0.0  ;;  %v2169_v40 = vadd.f32 %v2095_v55, %v2013_v44  ;;  %v1881_v32 = vadd.f32 %v1810_v33, %v4453_v57  ;;  %v4455_v35 = vld [vmem:[#allocation42_spill] sm:$0xff]  ;;  %v4456_v55 = vld [vmem:[#allocation40_spill] sm:$0xff] }
 0x220   : > { %2857 = vmatmul.msk.bf16.gmra.mxu0 %vm762_vm4, %v4450_v50 }
 0x221   : > { %2444 = vst [vmem:[%s4079_s22 + $0x18] sm:$0xff] %v2412_v3  ;;  %v2309_v19 = vadd.f32 %v2235_v13, %v2169_v40  ;;  %v1941_v39 = vpop.f32.mrf.mxu2  ;;  %2802 = vmatmul.msk.bf16.gmra.mxu1 %vm762_vm4, %v4450_v50 }
 0x222   : > { %v2014_v4 = vadd.f32 %v1941_v39, %v1880_v6  ;;  %v4457_v39 = vld [vmem:[#allocation9_spill] sm:$0xff] }
 0x223   : > { %v2345_v18 = vmul.f32 %v4060_v42, %v2309_v19 }
 0x225   : > { %v2381_v21 = vadd.f32 %v4068_v27, %v2345_v18  ;;  %v2237_v34 = vpop.f32.mrf.mxu0 }
 0x226   : > { %v2097_v62 = vpop.f32.mrf.mxu3  ;;  %2823 = vmatmul.msk.bf16.gmra.mxu2 %vm762_vm4, %v4452_v45  ;;  %v1812_v10 = vpop.f32.mrf.mxu1 }
 0x227   : > { %v2413_v24 = vmax.f32 %v2381_v21, 0.0  ;;  %v2170_v1 = vadd.f32 %v2097_v62, %v2014_v4  ;;  %v1882_v33 = vadd.f32 %v1812_v10, %v4456_v55  ;;  %v4458_v62 = vld [vmem:[#allocation41_spill] sm:$0xff] }
 0x229   : > { %2445 = vst [vmem:[%s4079_s22 + $0x20] sm:$0xff] %v2413_v24  ;;  %v2310_v12 = vadd.f32 %v2237_v34, %v2170_v1  ;;  %v1944_v25 = vpop.f32.mrf.mxu2  ;;  %v4459_v1 = vld [vmem:[#allocation13_spill] sm:$0xff] }
 0x22a   : > { %v2015_v41 = vadd.f32 %v1944_v25, %v1881_v32 }
 0x22b   : > { %v2346_v38 = vmul.f32 %v4060_v42, %v2310_v12  ;;  %2840 = vmatmul.msk.bf16.gmra.mxu3 %vm762_vm4, %v4454_v60 }
 0x22d   : > { %v2382_v9 = vadd.f32 %v4068_v27, %v2346_v38  ;;  %v2240_v43 = vpop.f32.mrf.mxu0 }
 0x22e   : > { %v2100_v37 = vpop.f32.mrf.mxu3  ;;  %v1815_v17 = vpop.f32.mrf.mxu1 }
 0x22f   : > { %v2414_v15 = vmax.f32 %v2382_v9, 0.0  ;;  %v2171_v44 = vadd.f32 %v2100_v37, %v2015_v41  ;;  %v1883_v45 = vadd.f32 %v1815_v17, %v4458_v62  ;;  %v4460_v9 = vld [vmem:[#allocation44_spill] sm:$0xff]  ;;  %v4461_v37 = vld [vmem:[#allocation10_spill] sm:$0xff]  ;;  %v4463_v62 = vld [vmem:[#allocation45_spill] sm:$0xff] }
 0x230   : > { %2858 = vmatmul.msk.bf16.gmra.mxu0 %vm762_vm4, %v4455_v35 }
 0x231   : > { %2446 = vst [vmem:[%s4079_s22 + $0x28] sm:$0xff] %v2414_v15  ;;  %v2311_v13 = vadd.f32 %v2240_v43, %v2171_v44  ;;  %v1946_v3 = vpop.f32.mrf.mxu2  ;;  %2803 = vmatmul.msk.bf16.gmra.mxu1 %vm762_vm4, %v4455_v35 }
 0x232   : > { %v2016_v50 = vadd.f32 %v1946_v3, %v1882_v33 }
 0x233   : > { %v2347_v40 = vmul.f32 %v4060_v42, %v2311_v13 }
 0x235   : > { %v2383_v19 = vadd.f32 %v4068_v27, %v2347_v40  ;;  %v2242_v48 = vpop.f32.mrf.mxu0 }
 0x236   : > { %v2102_v6 = vpop.f32.mrf.mxu3  ;;  %2824 = vmatmul.msk.bf16.gmra.mxu2 %vm762_vm4, %v4457_v39  ;;  %v1817_v18 = vpop.f32.mrf.mxu1 }
 0x237   : > { %v2415_v4 = vmax.f32 %v2383_v19, 0.0  ;;  %v2172_v21 = vadd.f32 %v2102_v6, %v2016_v50  ;;  %v1884_v17 = vadd.f32 %v1817_v18, %v4461_v37 }
 0x239   : > { %2447 = vst [vmem:[%s4079_s22 + $0x30] sm:$0xff] %v2415_v4  ;;  %v2312_v34 = vadd.f32 %v2242_v48, %v2172_v21  ;;  %v1949_v10 = vpop.f32.mrf.mxu2  ;;  %v4462_v48 = vld [vmem:[#allocation43_spill] sm:$0xff] }
 0x23a   : > { %v2017_v12 = vadd.f32 %v1949_v10, %v1883_v45  ;;  %v4153_v45 = vld [vmem:[%s3145_s24 + $0xcc] sm:$0xf]  ;;  %v4156_v10 = vld [vmem:[%s3145_s24 + $0xd0] sm:$0xf] }
 0x23b   : > { %v2348_v24 = vmul.f32 %v4060_v42, %v2312_v34  ;;  %2841 = vmatmul.msk.bf16.gmra.mxu3 %vm762_vm4, %v4459_v1 }
 0x23d   : > { %v2384_v57 = vadd.f32 %v4068_v27, %v2348_v24  ;;  %v2245_v32 = vpop.f32.mrf.mxu0 }
 0x23e   : > { %v2105_v25 = vpop.f32.mrf.mxu3  ;;  %v1820_v38 = vpop.f32.mrf.mxu1 }
 0x23f   : > { %v2416_v60 = vmax.f32 %v2384_v57, 0.0  ;;  %v2173_v41 = vadd.f32 %v2105_v25, %v2017_v12  ;;  %v1885_v6 = vadd.f32 %v1820_v38, %v4462_v48  ;;  %v2045_v38 = vshll.u32 %v4153_v45, 16 }
 0x240   : > { %2859 = vmatmul.msk.bf16.gmra.mxu0 %vm762_vm4, %v4460_v9 }
 0x241   : > { %2448 = vst [vmem:[%s4079_s22 + $0x38] sm:$0xff] %v2416_v60  ;;  %v2313_v43 = vadd.f32 %v2245_v32, %v2173_v41  ;;  %v1951_v15 = vpop.f32.mrf.mxu2  ;;  %2804 = vmatmul.msk.bf16.gmra.mxu1 %vm762_vm4, %v4460_v9  ;;  %v4464_v32 = vld [vmem:[#allocation8_spill] sm:$0xff]  ;;  %v2051_v60 = vshll.u32 %v4156_v10, 16  ;;  %v2055_v41 = vshrl.u32 %v4156_v10, 16 }
 0x242   : > { %v2018_v35 = vadd.f32 %v1951_v15, %v1884_v17  ;;  %v2789_v25 = vrot.slane %v4464_v32, 9  ;;  %v1773_v15 = vrot.slane %v3897_v11, 5 }
 0x243   : > { %v2349_v44 = vmul.f32 %v4060_v42, %v2313_v43 }
 0x245   : > { %v2385_v13 = vadd.f32 %v4068_v27, %v2349_v44  ;;  %v2247_v55 = vpop.f32.mrf.mxu0 }
 0x246   : > { %v2107_v33 = vpop.f32.mrf.mxu3  ;;  %2825 = vmatmul.msk.bf16.gmra.mxu2 %vm762_vm4, %v3890_v30  ;;  %v1822_v3 = vpop.f32.mrf.mxu1  ;;  %v1770_v30 = vrot.slane %v4463_v62, 5 }
 0x247   : > { %v2417_v40 = vmax.f32 %v2385_v13, 0.0  ;;  %v2174_v50 = vadd.f32 %v2107_v33, %v2018_v35  ;;  %v1886_v43 = vadd.f32 %v1822_v3, %v3894_v49  ;;  %v2047_v33 = vrot.slane %v2045_v38, 5 }
 0x248   : > { %v1772_v17 = vrot.slane %v1770_v30, 4  ;;  %v1771_v13 = vsel %vm3475_vm7, %v2789_v25, %v1770_v30 }
 0x249   : > { %2449 = vst [vmem:[%s4079_s22 + $0x40] sm:$0xff] %v2417_v40  ;;  %v2314_v19 = vadd.f32 %v2247_v55, %v2174_v50  ;;  %v1954_v39 = vpop.f32.mrf.mxu2  ;;  %v2053_v40 = vrot.slane %v2051_v60, 5  ;;  %v2057_v50 = vrot.slane %v2055_v41, 4 }
 0x24a   : > { %v2019_v4 = vadd.f32 %v1954_v39, %v1885_v6 }
 0x24b   : > { %v2350_v18 = vmul.f32 %v4060_v42, %v2314_v19  ;;  %2842 = vmatmul.msk.bf16.gmra.mxu3 %vm762_vm4, %v3484_v53  ;;  %v2042_v53 = vshrl.u32 %v4153_v45, 16  ;;  %v323_v19 = vld [vmem:[%s3145_s24 + $0xd4] sm:$0x1] }
 0x24c   : > { %v2061_v62 = vshll.u32 %v323_v19, 16 }
 0x24d   : > { %v2386_v21 = vadd.f32 %v4068_v27, %v2350_v18  ;;  %v2250_v34 = vpop.f32.mrf.mxu0  ;;  %v2044_v55 = vrot.slane %v2042_v53, 4  ;;  %v1777_v18 = vunpack.c.l.b16 %v1771_v13 }
 0x24e   : > { %v2110_v24 = vpop.f32.mrf.mxu3  ;;  %v1825_v1 = vpop.f32.mrf.mxu1  ;;  %v2063_v38 = vrot.slane %v2061_v62, 5 }
 0x24f   : > { %v2418_v12 = vmax.f32 %v2386_v21, 0.0  ;;  %v2175_v57 = vadd.f32 %v2110_v24, %v2019_v4  ;;  %v2048_v21 = vor.u32 %v2047_v33, %v2044_v55  ;;  %v1887_v24 = vadd.f32 %v1825_v1, %v3911_v7  ;;  %v2885_v33 = vld [vmem:[%s3145_s24 + $0xcc] sm:$0xff]  ;;  %s2886_s24 = sshll.u32 %s3028_s18, 8  ;;  %s2474_s18 = scalar_lea.sflag [#allocation3], %s246_s12 }
 0x250   : > { %2860 = vmatmul.msk.bf16.gmra.mxu0 %vm762_vm4, %v3913_v46  ;;  %v2203_v55 = vrot.slane %v323_v19, 5  ;;  %s2489_s30 = scalar_lea.hbm %s4324_s4, %s2886_s24 }
 0x251   : > { %2450 = vst [vmem:[%s4079_s22 + $0x48] sm:$0xff] %v2418_v12  ;;  %v2315_v9 = vadd.f32 %v2250_v34, %v2175_v57  ;;  %v1956_v37 = vpop.f32.mrf.mxu2  ;;  %2805 = vmatmul.msk.bf16.gmra.mxu1 %vm762_vm4, %v3913_v46  ;;  %v1774_v46 = vsel %vm3475_vm7, %v1772_v17, %v1773_v15  ;;  %v2058_v34 = vor.u32 %v2057_v50, %v2053_v40  ;;  %v2049_v25 = vrot.slane %v2048_v21, 4  ;;  %s2492_s6 = sshll.u32 %s2489_s30, 4  ;;  %s2493_s6 = int_to_ptr.hbm [resolvable:$true] %s2492_s6 }
 0x252   : > { %v2020_v35 = vadd.f32 %v1956_v37, %v1886_v43  ;;  %v1778_v4 = vunpack.c.l.b16 %v1774_v46  ;;  %v2845_v15 = vrot.slane %v4153_v45, 9  ;;  %s2972_s7 = sshra.s32 %s2493_s6, 4  ;;  %s2973_s7 = int_to_ptr.hbm [resolvable:$true] %s2972_s7 }
 0x253   : > { %v2351_v44 = vmul.f32 %v4060_v42, %v2315_v9  ;;  %v2059_v53 = vrot.slane %v2058_v34, 4  ;;  %v2200_v9 = vrot.slane %v4156_v10, 5  ;;  %s2974_s8 = scalar_lea.hbm %s2973_s7, 256  ;;  %p2979_p1 = scmp.lt.s32.totalorder %s2973_s7, %s4324_s4 }
 0x254   : > { %p2975_p12 = scmp.ne.s32.totalorder %s2973_s7, %s2974_s8  ;;  %p2980_p2 = scmp.lt.s32.totalorder %s2978_s11, %s2974_s8 }
 0x255   : > { %v2387_v49 = vadd.f32 %v4068_v27, %v2351_v44  ;;  %v2252_v3 = vpop.f32.mrf.mxu0  ;;  %v2064_v17 = vsel %vm3172_vm3, %v2059_v53, %v2063_v38  ;;  %v2202_v13 = vrot.slane %v2200_v9, 4  ;;  %v2201_v45 = vsel %vm3475_vm7, %v2845_v15, %v2200_v9 }
 0x256   : > { %v2112_v48 = vpop.f32.mrf.mxu3  ;;  %2826 = vmatmul.msk.bf16.gmra.mxu2 %vm762_vm4, %v3922_v54  ;;  %v1827_v11 = vpop.f32.mrf.mxu1  ;;  %v1779_v54 = vpack.c.b16 %v1778_v4, %v1777_v18  ;;  %v2207_v18 = vunpack.c.l.b16 %v2201_v45  ;;  %p2976_p13 = pnand %p2975_p12, %p3105_p4  ;;  %p2981_p3 = por %p2980_p2, %p2979_p1 }
 0x257   : > { %v2419_v6 = vmax.f32 %v2387_v49, 0.0  ;;  %v2176_v39 = vadd.f32 %v2112_v48, %v2020_v35  ;;  %v1888_v35 = vadd.f32 %v1827_v11, %v3925_v28  ;;  %v2204_v28 = vsel %vm3475_vm7, %v2202_v13, %v2203_v55 }
 0x258   : > { %v2208_v4 = vunpack.c.l.b16 %v2204_v28  ;;  %p2977_p0 = pneg %p2976_p13 }
 0x259   : > { %2451 = vst [vmem:[%s4079_s22 + $0x50] sm:$0xff] %v2419_v6  ;;  %v2316_v30 = vadd.f32 %v2252_v3, %v2176_v39  ;;  %v1959_v12 = vpop.f32.mrf.mxu2  ;;  %v2068_v3 = vunpack.c.l.b16 %v2064_v17 }
 0x25a   : > { %v2021_v32 = vadd.f32 %v1959_v12, %v1887_v24  ;;  %v2209_v24 = vpack.c.b16 %v2208_v4, %v2207_v18  ;;  %p2982_p5 = pnand %p2981_p3, %p2977_p0 }
 0x25b   : > { %v2352_v57 = vmul.f32 %v4060_v42, %v2316_v30  ;;  %2843 = vmatmul.msk.bf16.gmra.mxu3 %vm762_vm4, %v3929_v22  ;;  %v2054_v22 = vsel %vm3172_vm3, %v2049_v25, %v2053_v40 }
 0x25c   : > { %v2067_v40 = vunpack.c.l.b16 %v2054_v22 }
 0x25d   : > { %v2388_v60 = vadd.f32 %v4068_v27, %v2352_v57  ;;  %v2255_v41 = vpop.f32.mrf.mxu0 }
 0x25e   : > { %v2115_v43 = vpop.f32.mrf.mxu3  ;;  %v1830_v7 = vpop.f32.mrf.mxu1  ;;  %v2069_v39 = vpack.c.b16 %v2068_v3, %v2067_v40 }
 0x25f   : > { %v2420_v1 = vmax.f32 %v2388_v60, 0.0  ;;  %v2177_v37 = vadd.f32 %v2115_v43, %v2021_v32  ;;  %v1889_v34 = vadd.f32 %v1830_v7, %v3936_v58 }
 0x260   : > { %2861 = vmatmul.msk.bf16.gmra.mxu0 %vm762_vm4, %v1779_v54 }
 0x261   : > { %2452 = vst [vmem:[%s4079_s22 + $0x58] sm:$0xff] %v2420_v1  ;;  %v2317_v44 = vadd.f32 %v2255_v41, %v2177_v37  ;;  %v1961_v10 = vpop.f32.mrf.mxu2  ;;  %2806 = vmatmul.msk.bf16.gmra.mxu1 %vm762_vm4, %v1779_v54 }
 0x262   : > { %v2022_v49 = vadd.f32 %v1961_v10, %v1888_v35 }
 0x263   : > { %v2353_v50 = vmul.f32 %v4060_v42, %v2317_v44 }
 0x265   : > { %v2389_v36 = vadd.f32 %v4068_v27, %v2353_v50  ;;  %v2257_v46 = vpop.f32.mrf.mxu0 }
 0x266   : > { %v2117_v48 = vpop.f32.mrf.mxu3  ;;  %2827 = vmatmul.msk.bf16.gmra.mxu2 %vm762_vm4, %v2885_v33  ;;  %v1832_v19 = vpop.f32.mrf.mxu1 }
 0x267   : > { %v2421_v11 = vmax.f32 %v2389_v36, 0.0  ;;  %v2178_v6 = vadd.f32 %v2117_v48, %v2022_v49  ;;  %v1890_v58 = vadd.f32 %v1832_v19, %v3941_v31 }
 0x269   : > { %2453 = vst [vmem:[%s4079_s22 + $0x60] sm:$0xff] %v2421_v11  ;;  %v2318_v21 = vadd.f32 %v2257_v46, %v2178_v6  ;;  %v1964_v62 = vpop.f32.mrf.mxu2 }
 0x26a   : > { %v2023_v14 = vadd.f32 %v1964_v62, %v1889_v34 }
 0x26b   : > { %v2354_v30 = vmul.f32 %v4060_v42, %v2318_v21  ;;  %2844 = vmatmul.msk.bf16.gmra.mxu3 %vm762_vm4, %v2069_v39 }
 0x26d   : > { %v2390_v12 = vadd.f32 %v4068_v27, %v2354_v30  ;;  %v2260_v57 = vpop.f32.mrf.mxu0 }
 0x26e   : > { %v2120_v32 = vpop.f32.mrf.mxu3  ;;  %v1835_v54 = vpop.f32.mrf.mxu1 }
 0x26f   : > { %v2422_v25 = vmax.f32 %v2390_v12, 0.0  ;;  %v2179_v53 = vadd.f32 %v2120_v32, %v2023_v14  ;;  %v1891_v44 = vadd.f32 %v1835_v54, %v3950_v16 }
 0x270   : > { %2862 = vmatmul.msk.bf16.gmra.mxu0 %vm762_vm4, %v2209_v24 }
 0x271   : > { %2454 = vst [vmem:[%s4079_s22 + $0x68] sm:$0xff] %v2422_v25  ;;  %v2319_v38 = vadd.f32 %v2260_v57, %v2179_v53  ;;  %v1966_v60 = vpop.f32.mrf.mxu2 }
 0x272   : > { %v2024_v9 = vadd.f32 %v1966_v60, %v1890_v58 }
 0x273   : > { %v2355_v41 = vmul.f32 %v4060_v42, %v2319_v38 }
 0x275   : > { %v2391_v43 = vadd.f32 %v4068_v27, %v2355_v41  ;;  %v2262_v7 = vpop.f32.mrf.mxu0 }
 0x276   : > { %v2122_v1 = vpop.f32.mrf.mxu3  ;;  %v1837_v37 = vpop.f32.mrf.mxu1 }
 0x277   : > { %v2423_v22 = vmax.f32 %v2391_v43, 0.0  ;;  %v2180_v17 = vadd.f32 %v2122_v1, %v2024_v9  ;;  %v1892_v36 = vadd.f32 %v1837_v37, %v3955_v26 }
 0x279   : > { %2455 = vst [vmem:[%s4079_s22 + $0x70] sm:$0xff] %v2423_v22  ;;  %v2320_v15 = vadd.f32 %v2262_v7, %v2180_v17  ;;  %v1969_v35 = vpop.f32.mrf.mxu2 }
 0x27a   : > { %v2025_v31 = vadd.f32 %v1969_v35, %v1891_v44 }
 0x27b   : > { %v2356_v10 = vmul.f32 %v4060_v42, %v2320_v15 }
 0x27d   : > { %v2392_v13 = vadd.f32 %v4068_v27, %v2356_v10  ;;  %v2265_v55 = vpop.f32.mrf.mxu0 }
 0x27e   : > { %v2125_v33 = vpop.f32.mrf.mxu3  ;;  %v1840_v50 = vpop.f32.mrf.mxu1 }
 0x27f   : > { %v2424_v49 = vmax.f32 %v2392_v13, 0.0  ;;  %v2181_v40 = vadd.f32 %v2125_v33, %v2025_v31  ;;  %v1893_v4 = vadd.f32 %v1840_v50, %v3964_v59 }
 0x281   : > { %2456 = vst [vmem:[%s4079_s22 + $0x78] sm:$0xff] %v2424_v49  ;;  %v2321_v3 = vadd.f32 %v2265_v55, %v2181_v40  ;;  %v1971_v46 = vpop.f32.mrf.mxu2 }
 0x282   : > { %v2026_v16 = vadd.f32 %v1971_v46, %v1892_v36 }
 0x283   : > { %v2357_v45 = vmul.f32 %v4060_v42, %v2321_v3 }
 0x285   : > { %v2393_v28 = vadd.f32 %v4068_v27, %v2357_v45  ;;  %v2267_v48 = vpop.f32.mrf.mxu0 }
 0x286   : > { %v2127_v19 = vpop.f32.mrf.mxu3  ;;  %v1842_v11 = vpop.f32.mrf.mxu1 }
 0x287   : > { %v2425_v6 = vmax.f32 %v2393_v28, 0.0  ;;  %v2182_v39 = vadd.f32 %v2127_v19, %v2026_v16  ;;  %v1894_v54 = vadd.f32 %v1842_v11, %v3969_v47 }
 0x289   : > { %2457 = vst [vmem:[%s4079_s22 + $0x80] sm:$0xff] %v2425_v6  ;;  %v2322_v18 = vadd.f32 %v2267_v48, %v2182_v39  ;;  %v1974_v21 = vpop.f32.mrf.mxu2 }
 0x28a   : > { %v2027_v26 = vadd.f32 %v1974_v21, %v1893_v4 }
 0x28b   : > { %v2358_v34 = vmul.f32 %v4060_v42, %v2322_v18 }
 0x28d   : > { %v2394_v62 = vadd.f32 %v4068_v27, %v2358_v34  ;;  %v2270_v30 = vpop.f32.mrf.mxu0 }
 0x28e   : > { %v2130_v14 = vpop.f32.mrf.mxu3  ;;  %v1845_v24 = vpop.f32.mrf.mxu1 }
 0x28f   : > { %v2426_v12 = vmax.f32 %v2394_v62, 0.0  ;;  %v2183_v57 = vadd.f32 %v2130_v14, %v2027_v26  ;;  %v1895_v1 = vadd.f32 %v1845_v24, %v3978_v23 }
 0x291   : > { %2458 = vst [vmem:[%s4079_s22 + $0x88] sm:$0xff] %v2426_v12  ;;  %v2323_v32 = vadd.f32 %v2270_v30, %v2183_v57  ;;  %v1976_v25 = vpop.f32.mrf.mxu2 }
 0x292   : > { %v2028_v59 = vadd.f32 %v1976_v25, %v1894_v54 }
 0x293   : > { %v2359_v53 = vmul.f32 %v4060_v42, %v2323_v32 }
 0x295   : > { %v2395_v38 = vadd.f32 %v4068_v27, %v2359_v53  ;;  %v2272_v58 = vpop.f32.mrf.mxu0 }
 0x296   : > { %v2132_v60 = vpop.f32.mrf.mxu3  ;;  %v1847_v41 = vpop.f32.mrf.mxu1 }
 0x297   : > { %v2427_v9 = vmax.f32 %v2395_v38, 0.0  ;;  %v2184_v43 = vadd.f32 %v2132_v60, %v2028_v59  ;;  %v1896_v55 = vadd.f32 %v1847_v41, %v3983_v61 }
 0x299   : > { %2459 = vst [vmem:[%s4079_s22 + $0x90] sm:$0xff] %v2427_v9  ;;  %v2324_v7 = vadd.f32 %v2272_v58, %v2184_v43  ;;  %v1979_v37 = vpop.f32.mrf.mxu2 }
 0x29a   : > { %v2029_v47 = vadd.f32 %v1979_v37, %v1895_v1 }
 0x29b   : > { %v2360_v22 = vmul.f32 %v4060_v42, %v2324_v7 }
 0x29d   : > { %v2396_v17 = vadd.f32 %v4068_v27, %v2360_v22  ;;  %v2275_v15 = vpop.f32.mrf.mxu0 }
 0x29e   : > { %v2135_v44 = vpop.f32.mrf.mxu3  ;;  %v1850_v35 = vpop.f32.mrf.mxu1 }
 0x29f   : > { %v2428_v10 = vmax.f32 %v2396_v17, 0.0  ;;  %v2185_v31 = vadd.f32 %v2135_v44, %v2029_v47  ;;  %v1897_v28 = vadd.f32 %v1850_v35, %v3992_v56 }
 0x2a1   : > { %2460 = vst [vmem:[%s4079_s22 + $0x98] sm:$0xff] %v2428_v10  ;;  %v2325_v13 = vadd.f32 %v2275_v15, %v2185_v31  ;;  %v1981_v33 = vpop.f32.mrf.mxu2 }
 0x2a2   : > { %v2030_v23 = vadd.f32 %v1981_v33, %v1896_v55 }
 0x2a3   : > { %v2361_v50 = vmul.f32 %v4060_v42, %v2325_v13 }
 0x2a5   : > { %v2397_v49 = vadd.f32 %v4068_v27, %v2361_v50  ;;  %v2277_v40 = vpop.f32.mrf.mxu0 }
 0x2a6   : > { %v2137_v3 = vpop.f32.mrf.mxu3  ;;  %v1852_v36 = vpop.f32.mrf.mxu1 }
 0x2a7   : > { %v2429_v46 = vmax.f32 %v2397_v49, 0.0  ;;  %v2186_v45 = vadd.f32 %v2137_v3, %v2030_v23  ;;  %v1898_v26 = vadd.f32 %v1852_v36, %v3997_v0 }
 0x2a9   : > { %2461 = vst [vmem:[%s4079_s22 + $0xa0] sm:$0xff] %v2429_v46  ;;  %v2326_v16 = vadd.f32 %v2277_v40, %v2186_v45  ;;  %v1984_v48 = vpop.f32.mrf.mxu2 }
 0x2aa   : > { %v2031_v61 = vadd.f32 %v1984_v48, %v1897_v28 }
 0x2ab   : > { %v2362_v19 = vmul.f32 %v4060_v42, %v2326_v16 }
 0x2ad   : > { %v2398_v11 = vadd.f32 %v4068_v27, %v2362_v19  ;;  %v2280_v6 = vpop.f32.mrf.mxu0 }
 0x2ae   : > { %v2140_v39 = vpop.f32.mrf.mxu3  ;;  %v1855_v18 = vpop.f32.mrf.mxu1 }
 0x2af   : > { %v2430_v4 = vmax.f32 %v2398_v11, 0.0  ;;  %v2187_v21 = vadd.f32 %v2140_v39, %v2031_v61  ;;  %v1899_v53 = vadd.f32 %v1855_v18, %v4006_v29 }
 0x2b1   : > { %2462 = vst [vmem:[%s4079_s22 + $0xa8] sm:$0xff] %v2430_v4  ;;  %v2327_v34 = vadd.f32 %v2280_v6, %v2187_v21  ;;  %v1986_v62 = vpop.f32.mrf.mxu2 }
 0x2b2   : > { %v2032_v56 = vadd.f32 %v1986_v62, %v1898_v26 }
 0x2b3   : > { %v2363_v30 = vmul.f32 %v4060_v42, %v2327_v34 }
 0x2b5   : > { %v2399_v14 = vadd.f32 %v4068_v27, %v2363_v30  ;;  %v2282_v24 = vpop.f32.mrf.mxu0 }
 0x2b6   : > { %v2142_v12 = vpop.f32.mrf.mxu3  ;;  %v1857_v57 = vpop.f32.mrf.mxu1 }
 0x2b7   : > { %v2431_v32 = vmax.f32 %v2399_v14, 0.0  ;;  %v2188_v54 = vadd.f32 %v2142_v12, %v2032_v56  ;;  %v1900_v37 = vadd.f32 %v1857_v57, %v4011_v52 }
 0x2b9   : > { %2463 = vst [vmem:[%s4079_s22 + $0xb0] sm:$0xff] %v2431_v32  ;;  %v2328_v25 = vadd.f32 %v2282_v24, %v2188_v54  ;;  %v1989_v59 = vpop.f32.mrf.mxu2 }
 0x2ba   : > { %v2033_v0 = vadd.f32 %v1989_v59, %v1899_v53 }
 0x2bb   : > { %v2364_v38 = vmul.f32 %v4060_v42, %v2328_v25 }
 0x2bd   : > { %v2400_v58 = vadd.f32 %v4068_v27, %v2364_v38  ;;  %v2285_v60 = vpop.f32.mrf.mxu0 }
 0x2be   : > { %v2145_v41 = vpop.f32.mrf.mxu3  ;;  %v1860_v9 = vpop.f32.mrf.mxu1 }
 0x2bf   : > { %v2432_v43 = vmax.f32 %v2400_v58, 0.0  ;;  %v2189_v7 = vadd.f32 %v2145_v41, %v2033_v0  ;;  %v1901_v55 = vadd.f32 %v1860_v9, %v4020_v20 }
 0x2c1   : > { %2464 = vst [vmem:[%s4079_s22 + $0xb8] sm:$0xff] %v2432_v43  ;;  %v2329_v1 = vadd.f32 %v2285_v60, %v2189_v7  ;;  %v1991_v22 = vpop.f32.mrf.mxu2 }
 0x2c2   : > { %v2034_v29 = vadd.f32 %v1991_v22, %v1900_v37 }
 0x2c3   : > { %v2365_v47 = vmul.f32 %v4060_v42, %v2329_v1 }
 0x2c5   : > { %v2401_v17 = vadd.f32 %v4068_v27, %v2365_v47  ;;  %v2287_v15 = vpop.f32.mrf.mxu0 }
 0x2c6   : > { %v2147_v44 = vpop.f32.mrf.mxu3  ;;  %v1862_v35 = vpop.f32.mrf.mxu1 }
 0x2c7   : > { %v2433_v10 = vmax.f32 %v2401_v17, 0.0  ;;  %v2190_v31 = vadd.f32 %v2147_v44, %v2034_v29  ;;  %v1902_v16 = vadd.f32 %v1862_v35, %v4025_v8 }
 0x2c9   : > { %2465 = vst [vmem:[%s4079_s22 + $0xc0] sm:$0xff] %v2433_v10  ;;  %v2330_v13 = vadd.f32 %v2287_v15, %v2190_v31  ;;  %v1994_v33 = vpop.f32.mrf.mxu2 }
 0x2ca   : > { %v2035_v52 = vadd.f32 %v1994_v33, %v1901_v55 }
 0x2cb   : > { %v2366_v50 = vmul.f32 %v4060_v42, %v2330_v13 }
 0x2cd   : > { %v2402_v23 = vadd.f32 %v4068_v27, %v2366_v50  ;;  %v2290_v49 = vpop.f32.mrf.mxu0 }
 0x2ce   : > { %v2150_v40 = vpop.f32.mrf.mxu3  ;;  %v1865_v46 = vpop.f32.mrf.mxu1 }
 0x2cf   : > { %v2434_v3 = vmax.f32 %v2402_v23, 0.0  ;;  %v2191_v36 = vadd.f32 %v2150_v40, %v2035_v52  ;;  %v1903_v4 = vadd.f32 %v1865_v46, %v4034_v51 }
 0x2d1   : > { %2466 = vst [vmem:[%s4079_s22 + $0xc8] sm:$0xff] %v2434_v3  ;;  %v2331_v45 = vadd.f32 %v2290_v49, %v2191_v36  ;;  %v1996_v28 = vpop.f32.mrf.mxu2 }
 0x2d2   : > { %v2036_v20 = vadd.f32 %v1996_v28, %v1902_v16 }
 0x2d3   : > { %v2367_v48 = vmul.f32 %v4060_v42, %v2331_v45 }
 0x2d5   : > { %v2403_v19 = vadd.f32 %v4068_v27, %v2367_v48  ;;  %v2292_v61 = vpop.f32.mrf.mxu0 }
 0x2d6   : > { %v2152_v11 = vpop.f32.mrf.mxu3  ;;  %v1867_v34 = vpop.f32.mrf.mxu1 }
 0x2d7   : > { %v2435_v6 = vmax.f32 %v2403_v19, 0.0  ;;  %v2192_v39 = vadd.f32 %v2152_v11, %v2036_v20  ;;  %v1904_v57 = vadd.f32 %v1867_v34, %v4039_v63 }
 0x2d9   : > { %2467 = vst [vmem:[%s4079_s22 + $0xd0] sm:$0xff] %v2435_v6  ;;  %v2332_v18 = vadd.f32 %v2292_v61, %v2192_v39  ;;  %v1999_v21 = vpop.f32.mrf.mxu2 }
 0x2da   : > { %v2037_v8 = vadd.f32 %v1999_v21, %v1903_v4 }
 0x2db   : > { %v2368_v26 = vmul.f32 %v4060_v42, %v2332_v18 }
 0x2dd   : > { %v2404_v62 = vadd.f32 %v4068_v27, %v2368_v26  ;;  %v2295_v30 = vpop.f32.mrf.mxu0 }
 0x2de   : > { %v2155_v56 = vpop.f32.mrf.mxu3  ;;  %v1870_v25 = vpop.f32.mrf.mxu1 }
 0x2df   : > { %v2436_v14 = vmax.f32 %v2404_v62, 0.0  ;;  %v2193_v24 = vadd.f32 %v2155_v56, %v2037_v8  ;;  %v1905_v41 = vadd.f32 %v1870_v25, %v4048_v2 }
 0x2e1   : > { %2468 = vst [vmem:[%s4079_s22 + $0xd8] sm:$0xff] %v2436_v14  ;;  %v2333_v12 = vadd.f32 %v2295_v30, %v2193_v24  ;;  %v2001_v32 = vpop.f32.mrf.mxu2 }
 0x2e2   : > { %v2038_v51 = vadd.f32 %v2001_v32, %v1904_v57 }
 0x2e3   : > { %v2369_v54 = vmul.f32 %v4060_v42, %v2333_v12 }
 0x2e5   : > { %v2405_v53 = vadd.f32 %v4068_v27, %v2369_v54  ;;  %v2297_v59 = vpop.f32.mrf.mxu0 }
 0x2e6   : > { %v2157_v38 = vpop.f32.mrf.mxu3  ;;  %v1872_v1 = vpop.f32.mrf.mxu1 }
 0x2e7   : > { %v2437_v0 = vmax.f32 %v2405_v53, 0.0  ;;  %v2194_v58 = vadd.f32 %v2157_v38, %v2038_v51  ;;  %v1906_v15 = vadd.f32 %v1872_v1, %v4053_v5 }
 0x2e9   : > { %2469 = vst [vmem:[%s4079_s22 + $0xe0] sm:$0xff] %v2437_v0  ;;  %v2334_v60 = vadd.f32 %v2297_v59, %v2194_v58  ;;  %v2004_v9 = vpop.f32.mrf.mxu2 }
 0x2ea   : > { %v2039_v43 = vadd.f32 %v2004_v9, %v1905_v41 }
 0x2eb   : > { %v2370_v63 = vmul.f32 %v4060_v42, %v2334_v60 }
 0x2ed   : > { %v2406_v7 = vadd.f32 %v4068_v27, %v2370_v63  ;;  %v2300_v37 = vpop.f32.mrf.mxu0 }
 0x2ee   : > { %v2160_v22 = vpop.f32.mrf.mxu3 }
 0x2ef   : > { %v2438_v47 = vmax.f32 %v2406_v7, 0.0  ;;  %v2195_v29 = vadd.f32 %v2160_v22, %v2039_v43 }
 0x2f1   : > { %2470 = vst [vmem:[%s4079_s22 + $0xe8] sm:$0xff] %v2438_v47  ;;  %v2335_v17 = vadd.f32 %v2300_v37, %v2195_v29  ;;  %v2006_v44 = vpop.f32.mrf.mxu2 }
 0x2f2   : > { %v2040_v35 = vadd.f32 %v2006_v44, %v1906_v15 }
 0x2f3   : > { %v2371_v2 = vmul.f32 %v4060_v42, %v2335_v17 }
 0x2f5   : > { %v2407_v10 = vadd.f32 %v4068_v27, %v2371_v2  ;;  %v2302_v33 = vpop.f32.mrf.mxu0 }
 0x2f6   : > { %v2162_v31 = vpop.f32.mrf.mxu3 }
 0x2f7   : > { %v2439_v13 = vmax.f32 %v2407_v10, 0.0  ;;  %v2196_v55 = vadd.f32 %v2162_v31, %v2040_v35 }
 0x2f9   : > { %2471 = vst [vmem:[%s4079_s22 + $0xf0] sm:$0xff] %v2439_v13  ;;  %v2336_v5 = vadd.f32 %v2302_v33, %v2196_v55 }
 0x2fb   : > { %v2372_v50 = vmul.f32 %v4060_v42, %v2336_v5 }
 0x2fd   : > { %v2408_v52 = vadd.f32 %v4068_v27, %v2372_v50 }
 0x2ff   : > { %v2440_v23 = vmax.f32 %v2408_v52, 0.0 }
 0x301   : > { %2472 = vst [vmem:[%s4079_s22 + $0xf8] sm:$0xff] %v2440_v23 }
 0x302   : > { %2985 = shalt.err (!%p2982_p5)
}
 0x303   : > { %s3038_s12 = smov 128   ;;  %s3039_s21 = smov 8  }
 0x304   : > { %2891 = dma.vmem_to_hbm [thread:$0]  (%p3105_p4), %s2491_s5, 4096, %s2493_s6, %s2474_s18, %s3038_s12, %s3038_s12, %s3039_s21  }
 0x305 PF: > { %p2897_p6 = scmp.ge.s32.totalorder %s3036_s20, 2  ;;  %s2507_s22 = sand.u32 1, %s3016_s15  }
 0x306   : > { %s2508_s24 = scalar_lea.sflag [#allocation3], %s2507_s22 }
 0x307   : > { %p2894_p7 = pnand %p2897_p6, %p3112_p8 }
 0x309   : > { %p2895_p9 = pneg %p2894_p7 }
 0x30b   : > { %3011 = dma.done.wait (%p2895_p9), %s2508_s24, 4096  }
 0x30c   : > { %3013 = vsyncadd (%p2895_p9), %s2508_s24, 4294963200  ;;  %s17_s20 = sadd.s32 1, %s3036_s20   ;;  %s4465_s15 = smov %s3020_s16 }
 0x30d   : > { %p14_p10 = scmp.ge.s32.totalorder %s17_s20, 4   ;;  %s4466_s16 = smov %s3024_s17 }
 0x30e   : > { %s4467_s17 = smov %s3118_s28  ;;  %s4468_s18 = smov %s3032_s19 }
 0x30f   : > { %s4469_s19 = smov %s4471_s23  ;;  %16 = sbr.rel (!%p14_p10) target bundleno = 4 (0x4), region = 89 }
 0x314   :  { %2514 = vsyncpa [#allocation3], 1 }
 0x315   :  { %2516 = vsyncpa [#allocation3 + $0x1], 1 }

</bundles_post_ra>
